<compile_context>
chip_gen: v7x
topology: tpu7x:2x2x1
jax: 0.10.0
libtpu: 0.0.40
codegen_flags: <defaults>
</compile_context>

<pallas_src>
import jax
import jax.numpy as jnp
from jax.experimental import pallas as pl
from jax.experimental.pallas import tpu as pltpu


# ---------------------------------------------------------------------------
# Fused Pallas kernel: all hidden layers + final Linear + clamp, per batch tile
# ---------------------------------------------------------------------------
def make_fused_mlp_kernel(num_hidden_layers):
    """Kernel for: num_hidden_layers x [Linear(+folded BN) -> ReLU], then
    Linear(emb, 1) + clamp(0, 50).  Operates on one (TB, 2048) batch tile."""

    def kernel(*refs):
        # refs = (x, w0, s0, w1, s1, ..., w_out, b_out, o)
        x_ref = refs[0]
        o_ref = refs[-1]

        h = x_ref[...]                                   # (TB, 2048) bf16
        idx = 1
        for _ in range(num_hidden_layers):
            w_ref, s_ref = refs[idx], refs[idx + 1]
            idx += 2
            # bf16 MXU matmul, f32 accumulation; BN already folded into w / s.
            h = jnp.dot(h.astype(jnp.bfloat16), w_ref[...],
                        preferred_element_type=jnp.float32)
            h = jnp.maximum(h + s_ref[...], 0.0)         # folded bias/BN + ReLU

        # Final Linear(emb, 1): VPU multiply + XLU lane reduction on the resident
        # (TB, emb) activation.  Result is presented lane-dense as (1, TB).
        wout_ref, bout_ref = refs[idx], refs[idx + 1]
        y = jnp.sum(h * wout_ref[...], axis=-1)          # (TB,)  -- lanes
        y = y.reshape(1, -1) + bout_ref[...]             # (1, TB)
        y = jnp.clip(y, 0.0, 50.0)
        o_ref[...] = y.reshape(o_ref.shape).astype(o_ref.dtype)   # (1, 1, TB)

    return kernel


# ---------------------------------------------------------------------------
# Wrapper: batch-tiled pallas_call, weights resident, lane-dense output
# ---------------------------------------------------------------------------
def mlp_forward(x, hidden_params, final_params, *, tb=128):
    """Fused MLP forward.  x: (B, 2048) (ideally bf16).  Returns (B, 1) f32."""
    B, in_dim = x.shape
    emb = hidden_params[0]["w"].shape[1]
    num_hidden = len(hidden_params)
    w_out, b_out = final_params

    # Pad batch up to a multiple of the tile; garbage rows are sliced off below.
    nb = pl.cdiv(B, tb)
    Bp = nb * tb
    if Bp != B:
        x = jnp.pad(x, ((0, Bp - B), (0, 0)))

    args = [x]
    in_specs = [pl.BlockSpec((tb, in_dim), lambda i: (i, 0))]      # batch-tiled
    for p in hidden_params:
        args.append(p["w"])        # (din, dout) bf16, BN scale folded in
        args.append(p["shift"])    # (1, dout)   f32,  bias + BN shift folded in
        in_specs.append(pl.BlockSpec(p["w"].shape, lambda i: (0, 0)))      # resident
        in_specs.append(pl.BlockSpec(p["shift"].shape, lambda i: (0, 0)))  # resident
    args.append(w_out)             # (1, emb) f32
    args.append(b_out)             # (1, 1)   f32
    in_specs.append(pl.BlockSpec(w_out.shape, lambda i: (0, 0)))
    in_specs.append(pl.BlockSpec(b_out.shape, lambda i: (0, 0)))

    # Advisory cost estimate (mem-bound: dominated by the 2048 x emb weight fetch).
    flops = 2 * Bp * (sum(p["w"].shape[0] * p["w"].shape[1] for p in hidden_params)
                      + emb)
    bytes_accessed = (
        x.size * x.dtype.itemsize
        + sum(p["w"].size * p["w"].dtype.itemsize
              + p["shift"].size * p["shift"].dtype.itemsize for p in hidden_params)
        + w_out.size * w_out.dtype.itemsize + b_out.size * b_out.dtype.itemsize
        + Bp * 4)

    out = pl.pallas_call(
        make_fused_mlp_kernel(num_hidden),
        grid=(nb,),
        out_shape=jax.ShapeDtypeStruct((nb, 1, tb), jnp.float32),   # lane-dense slab
        in_specs=in_specs,
        out_specs=pl.BlockSpec((1, 1, tb), lambda i: (i, 0, 0)),
        compiler_params=pltpu.CompilerParams(
            dimension_semantics=("parallel",)),                     # v7x: both TCs
        cost_estimate=pl.CostEstimate(
            flops=flops, transcendentals=0, bytes_accessed=bytes_accessed),
    )(*args)

    # Layout plumbing only: (nb, 1, tb) slab -> (B, 1) column, drop batch padding.
    return out.reshape(Bp, 1)[:B]


# ---------------------------------------------------------------------------
# Parameter construction (deterministic, synthetic), with eval-BN folded in
# ---------------------------------------------------------------------------
def init_mlp_params(key, in_dim=2048, emb_dim=128, num_mlp_layers=3):
    """Mirrors torch.nn.Linear / BatchNorm1d(eval); folds BN into W and shift,
    stores hidden-layer weights in bfloat16 (MXU-native input dtype)."""
    params = []
    dims = [in_dim] + [emb_dim] * num_mlp_layers
    eps = 1e-5
    for li in range(num_mlp_layers):
        key, kw, kb, kg, kbeta, km, kv = jax.random.split(key, 7)
        din, dout = dims[li], dims[li + 1]
        w = jax.random.normal(kw, (din, dout), jnp.float32) * (1.0 / jnp.sqrt(din))
        b = jax.random.normal(kb, (1, dout), jnp.float32) * 0.1
        gamma = 1.0 + 0.1 * jax.random.normal(kg, (1, dout), jnp.float32)
        beta = 0.1 * jax.random.normal(kbeta, (1, dout), jnp.float32)
        running_mean = 0.1 * jax.random.normal(km, (1, dout), jnp.float32)
        running_var = jax.random.uniform(kv, (1, dout), jnp.float32, 0.5, 1.5)
        # Eval-mode BN:  bn(y) = gamma * (y - mean) / sqrt(var + eps) + beta
        scale = gamma / jnp.sqrt(running_var + eps)            # (1, dout)
        w_folded = (w * scale).astype(jnp.bfloat16)            # per-column scale
        shift_folded = (b - running_mean) * scale + beta       # f32 (1, dout)
        params.append(dict(w=w_folded, shift=shift_folded))
    # Final Linear(emb_dim, 1): stored as a (1, emb_dim) row for the lane reduce.
    key, kw, kb = jax.random.split(key, 3)
    w_out = jax.random.normal(kw, (1, emb_dim), jnp.float32) * (1.0 / jnp.sqrt(emb_dim))
    b_out = jax.random.normal(kb, (1, 1), jnp.float32) * 0.1
    return params, (w_out, b_out)


# ---------------------------------------------------------------------------
# Main
# ---------------------------------------------------------------------------
if __name__ == "__main__":
    # in_dim=2048 is hard-coded by the module's first Linear; emb_dim=128 is
    # lane-aligned; B=256 gives a 2-step batch grid (TB=128) so weight DMA is
    # amortized and v7x can shard tiles across both TensorCores.
    B, IN_DIM, EMB_DIM, N_LAYERS = 256, 2048, 128, 3

    key = jax.random.PRNGKey(0)
    key, kx = jax.random.split(key)
    # Producer emits bf16 activations directly (no standalone wrapper cast).
    x = jax.random.normal(kx, (B, IN_DIM), jnp.bfloat16)

    hidden_params, final_params = init_mlp_params(
        key, in_dim=IN_DIM, emb_dim=EMB_DIM, num_mlp_layers=N_LAYERS)

    out = mlp_forward(x, hidden_params, final_params, tb=128)
    out = jax.block_until_ready(out)
    assert out.shape == (B, 1)

    # Pure-JAX reference of the identical math (same bf16 weights / bf16 x,
    # f32 accumulation).  Note: accuracy vs. an all-f32 torch MLP should be
    # validated separately if further weight quantization (fp8/int8) is adopted.
    w_out, b_out = final_params
    h_ref = x
    for p in hidden_params:
        h_ref = jnp.maximum(
            jnp.dot(h_ref.astype(jnp.bfloat16), p["w"],
                    preferred_element_type=jnp.float32) + p["shift"],
            0.0)
    ref = jnp.clip(jnp.sum(h_ref * w_out, axis=-1, keepdims=True) + b_out, 0.0, 50.0)

    assert jnp.allclose(out, ref, atol=2e-3, rtol=2e-3), (
        f"max abs diff = {jnp.max(jnp.abs(out - ref))}")

    print("KERNEL_OK")
</pallas_src>

<mosaic_0001>
module attributes {stable_mosaic.version = 11 : i64} {
  func.func @kernel(%arg0: i32, %arg1: memref<128x2048xbf16, #tpu.memory_space<vmem>>, %arg2: memref<2048x128xbf16, #tpu.memory_space<vmem>>, %arg3: memref<1x128xf32, #tpu.memory_space<vmem>>, %arg4: memref<128x128xbf16, #tpu.memory_space<vmem>>, %arg5: memref<1x128xf32, #tpu.memory_space<vmem>>, %arg6: memref<128x128xbf16, #tpu.memory_space<vmem>>, %arg7: memref<1x128xf32, #tpu.memory_space<vmem>>, %arg8: memref<1x128xf32, #tpu.memory_space<vmem>>, %arg9: memref<1x1xf32, #tpu.memory_space<vmem>>, %arg10: memref<1x1x128xf32, #tpu.memory_space<vmem>>) attributes {dimension_semantics = [#tpu.dimension_semantics<parallel>], iteration_bounds = array<i64: 2>, scalar_prefetch = 0 : i64, scratch_operands = 0 : i64, tpu.core_type = #tpu.core_type<tc>, window_params = [{transform_indices = @transform_0, window_bounds = array<i64: 128, 2048>}, {pipeline_mode = #tpu.pipeline_mode<synchronous>, transform_indices = @transform_1, window_bounds = array<i64: 2048, 128>}, {pipeline_mode = #tpu.pipeline_mode<synchronous>, transform_indices = @transform_2, window_bounds = array<i64: 1, 128>}, {pipeline_mode = #tpu.pipeline_mode<synchronous>, transform_indices = @transform_3, window_bounds = array<i64: 128, 128>}, {pipeline_mode = #tpu.pipeline_mode<synchronous>, transform_indices = @transform_4, window_bounds = array<i64: 1, 128>}, {pipeline_mode = #tpu.pipeline_mode<synchronous>, transform_indices = @transform_5, window_bounds = array<i64: 128, 128>}, {pipeline_mode = #tpu.pipeline_mode<synchronous>, transform_indices = @transform_6, window_bounds = array<i64: 1, 128>}, {pipeline_mode = #tpu.pipeline_mode<synchronous>, transform_indices = @transform_7, window_bounds = array<i64: 1, 128>}, {pipeline_mode = #tpu.pipeline_mode<synchronous>, transform_indices = @transform_8, window_bounds = array<i64: 1, 1>}, {transform_indices = @transform_9, window_bounds = array<i64: 1, 1, 128>}]} {
    %c0 = arith.constant 0 : index
    %c0_0 = arith.constant 0 : index
    %0 = vector.load %arg1[%c0, %c0_0] : memref<128x2048xbf16, #tpu.memory_space<vmem>>, vector<128x2048xbf16>
    %c0_1 = arith.constant 0 : index
    %c0_2 = arith.constant 0 : index
    %1 = vector.load %arg2[%c0_1, %c0_2] : memref<2048x128xbf16, #tpu.memory_space<vmem>>, vector<2048x128xbf16>
    %cst = arith.constant dense<0.000000e+00> : vector<128x128xf32>
    %2 = tpu.matmul %0, %1, %cst {dimension_numbers = #tpu.dot_dimension_numbers<[1], [0], [0], [1], [0, 0, 1, 1], [], []>} : vector<128x2048xbf16>, vector<2048x128xbf16>, vector<128x128xf32> -> vector<128x128xf32>
    %c0_3 = arith.constant 0 : index
    %c0_4 = arith.constant 0 : index
    %3 = vector.load %arg3[%c0_3, %c0_4] : memref<1x128xf32, #tpu.memory_space<vmem>>, vector<1x128xf32>
    %4 = vector.broadcast %3 : vector<1x128xf32> to vector<128x128xf32>
    %5 = arith.addf %2, %4 : vector<128x128xf32>
    %cst_5 = arith.constant 0.000000e+00 : f32
    %6 = vector.broadcast %cst_5 : f32 to vector<128x128xf32>
    %7 = arith.maximumf %5, %6 : vector<128x128xf32>
    %8 = arith.truncf %7 : vector<128x128xf32> to vector<128x128xbf16>
    %c0_6 = arith.constant 0 : index
    %c0_7 = arith.constant 0 : index
    %9 = vector.load %arg4[%c0_6, %c0_7] : memref<128x128xbf16, #tpu.memory_space<vmem>>, vector<128x128xbf16>
    %cst_8 = arith.constant dense<0.000000e+00> : vector<128x128xf32>
    %10 = tpu.matmul %8, %9, %cst_8 {dimension_numbers = #tpu.dot_dimension_numbers<[1], [0], [0], [1], [0, 0, 1, 1], [], []>} : vector<128x128xbf16>, vector<128x128xbf16>, vector<128x128xf32> -> vector<128x128xf32>
    %c0_9 = arith.constant 0 : index
    %c0_10 = arith.constant 0 : index
    %11 = vector.load %arg5[%c0_9, %c0_10] : memref<1x128xf32, #tpu.memory_space<vmem>>, vector<1x128xf32>
    %12 = vector.broadcast %11 : vector<1x128xf32> to vector<128x128xf32>
    %13 = arith.addf %10, %12 : vector<128x128xf32>
    %cst_11 = arith.constant 0.000000e+00 : f32
    %14 = vector.broadcast %cst_11 : f32 to vector<128x128xf32>
    %15 = arith.maximumf %13, %14 : vector<128x128xf32>
    %16 = arith.truncf %15 : vector<128x128xf32> to vector<128x128xbf16>
    %c0_12 = arith.constant 0 : index
    %c0_13 = arith.constant 0 : index
    %17 = vector.load %arg6[%c0_12, %c0_13] : memref<128x128xbf16, #tpu.memory_space<vmem>>, vector<128x128xbf16>
    %cst_14 = arith.constant dense<0.000000e+00> : vector<128x128xf32>
    %18 = tpu.matmul %16, %17, %cst_14 {dimension_numbers = #tpu.dot_dimension_numbers<[1], [0], [0], [1], [0, 0, 1, 1], [], []>} : vector<128x128xbf16>, vector<128x128xbf16>, vector<128x128xf32> -> vector<128x128xf32>
    %c0_15 = arith.constant 0 : index
    %c0_16 = arith.constant 0 : index
    %19 = vector.load %arg7[%c0_15, %c0_16] : memref<1x128xf32, #tpu.memory_space<vmem>>, vector<1x128xf32>
    %20 = vector.broadcast %19 : vector<1x128xf32> to vector<128x128xf32>
    %21 = arith.addf %18, %20 : vector<128x128xf32>
    %cst_17 = arith.constant 0.000000e+00 : f32
    %22 = vector.broadcast %cst_17 : f32 to vector<128x128xf32>
    %23 = arith.maximumf %21, %22 : vector<128x128xf32>
    %c0_18 = arith.constant 0 : index
    %c0_19 = arith.constant 0 : index
    %24 = vector.load %arg8[%c0_18, %c0_19] : memref<1x128xf32, #tpu.memory_space<vmem>>, vector<1x128xf32>
    %25 = vector.broadcast %24 : vector<1x128xf32> to vector<128x128xf32>
    %26 = arith.mulf %23, %25 : vector<128x128xf32>
    %cst_20 = arith.constant dense<0.000000e+00> : vector<128xf32>
    %27 = vector.multi_reduction <add>, %26, %cst_20 [1] : vector<128x128xf32> to vector<128xf32>
    %28 = vector.shape_cast %27 : vector<128xf32> to vector<1x128xf32>
    %c0_21 = arith.constant 0 : index
    %c0_22 = arith.constant 0 : index
    %29 = vector.load %arg9[%c0_21, %c0_22] : memref<1x1xf32, #tpu.memory_space<vmem>>, vector<1x1xf32>
    %30 = vector.broadcast %29 : vector<1x1xf32> to vector<1x128xf32>
    %31 = arith.addf %28, %30 : vector<1x128xf32>
    %cst_23 = arith.constant 0.000000e+00 : f32
    %cst_24 = arith.constant 5.000000e+01 : f32
    %32 = vector.broadcast %cst_23 : f32 to vector<1x128xf32>
    %33 = arith.maximumf %32, %31 : vector<1x128xf32>
    %34 = vector.broadcast %cst_24 : f32 to vector<1x128xf32>
    %35 = arith.minimumf %34, %33 : vector<1x128xf32>
    %36 = vector.shape_cast %35 : vector<1x128xf32> to vector<1x1x128xf32>
    %c0_25 = arith.constant 0 : index
    %c0_26 = arith.constant 0 : index
    %c0_27 = arith.constant 0 : index
    %37 = vector.load %arg10[%c0_25, %c0_26, %c0_27] : memref<1x1x128xf32, #tpu.memory_space<vmem>>, vector<1x1x128xf32>
    tpu.vector_store %arg10[%c0_25, %c0_26, %c0_27], %36 {strides = array<i32>} : memref<1x1x128xf32, #tpu.memory_space<vmem>>, vector<1x1x128xf32>,
    return
  }
  func.func @transform_0(%arg0: i32) -> (i32, i32) {
    %c0_i32 = arith.constant 0 : i32
    %c0_i32_0 = arith.constant 0 : i32
    return %arg0, %c0_i32 : i32, i32
  }
  func.func @transform_1(%arg0: i32) -> (i32, i32) {
    %c0_i32 = arith.constant 0 : i32
    %c0_i32_0 = arith.constant 0 : i32
    %c0_i32_1 = arith.constant 0 : i32
    return %c0_i32, %c0_i32_0 : i32, i32
  }
  func.func @transform_2(%arg0: i32) -> (i32, i32) {
    %c0_i32 = arith.constant 0 : i32
    %c0_i32_0 = arith.constant 0 : i32
    %c0_i32_1 = arith.constant 0 : i32
    return %c0_i32, %c0_i32_0 : i32, i32
  }
  func.func @transform_3(%arg0: i32) -> (i32, i32) {
    %c0_i32 = arith.constant 0 : i32
    %c0_i32_0 = arith.constant 0 : i32
    %c0_i32_1 = arith.constant 0 : i32
    return %c0_i32, %c0_i32_0 : i32, i32
  }
  func.func @transform_4(%arg0: i32) -> (i32, i32) {
    %c0_i32 = arith.constant 0 : i32
    %c0_i32_0 = arith.constant 0 : i32
    %c0_i32_1 = arith.constant 0 : i32
    return %c0_i32, %c0_i32_0 : i32, i32
  }
  func.func @transform_5(%arg0: i32) -> (i32, i32) {
    %c0_i32 = arith.constant 0 : i32
    %c0_i32_0 = arith.constant 0 : i32
    %c0_i32_1 = arith.constant 0 : i32
    return %c0_i32, %c0_i32_0 : i32, i32
  }
  func.func @transform_6(%arg0: i32) -> (i32, i32) {
    %c0_i32 = arith.constant 0 : i32
    %c0_i32_0 = arith.constant 0 : i32
    %c0_i32_1 = arith.constant 0 : i32
    return %c0_i32, %c0_i32_0 : i32, i32
  }
  func.func @transform_7(%arg0: i32) -> (i32, i32) {
    %c0_i32 = arith.constant 0 : i32
    %c0_i32_0 = arith.constant 0 : i32
    %c0_i32_1 = arith.constant 0 : i32
    return %c0_i32, %c0_i32_0 : i32, i32
  }
  func.func @transform_8(%arg0: i32) -> (i32, i32) {
    %c0_i32 = arith.constant 0 : i32
    %c0_i32_0 = arith.constant 0 : i32
    %c0_i32_1 = arith.constant 0 : i32
    return %c0_i32, %c0_i32_0 : i32, i32
  }
  func.func @transform_9(%arg0: i32) -> (i32, i32, i32) {
    %c0_i32 = arith.constant 0 : i32
    %c0_i32_0 = arith.constant 0 : i32
    %c0_i32_1 = arith.constant 0 : i32
    return %arg0, %c0_i32, %c0_i32_0 : i32, i32, i32
  }
}

</mosaic_0001>

<bundles_post_ra>
// kernel: tpu_custom_call.1
= control target key start
LH: loop header
LB: loop body
LE: loop exit
PB: predicated region body
PF: predicated region fallthrough
CT: control target
= control target key end

     0   :  { %s5781_s0 = inlined_call_operand.hbm [shape: bf16[256,2048], index: 0, kind: input, shape index: {}]   ;;  %s5782_s1 = inlined_call_operand.hbm [shape: bf16[2048,128], index: 1, kind: input, shape index: {}]   ;;  %s5783_s2 = inlined_call_operand.vmem [shape: f32[1,128], index: 2, kind: input, shape index: {}]   ;;  %s5784_s3 = inlined_call_operand.hbm [shape: bf16[128,128], index: 3, kind: input, shape index: {}]   ;;  %s5785_s4 = inlined_call_operand.vmem [shape: f32[1,128], index: 4, kind: input, shape index: {}]   ;;  %s5786_s5 = inlined_call_operand.hbm [shape: bf16[128,128], index: 5, kind: input, shape index: {}]   ;;  %s5787_s6 = inlined_call_operand.vmem [shape: f32[1,128], index: 6, kind: input, shape index: {}]   ;;  %s5788_s7 = inlined_call_operand.vmem [shape: f32[1,128], index: 7, kind: input, shape index: {}]   ;;  %s5789_s8 = inlined_call_operand.<no memory space> [shape: f32[1,1], index: 8, kind: input, shape index: {}]   ;;  %s5790_s9 = inlined_call_operand.hbm [shape: f32[2,1,128], index: 9, kind: output, shape index: {}]  }
   0x1   :  { %v14_v0 = vstv %s5789_s8 }
   0x2   :  { %15 = vst [vmem:[#allocation2] sm:$0x1] %v14_v0 }
   0x3   :  { %16 = vsyncpa [#allocation4], 0 }
   0x4   :  { %18 = vsyncpa [#allocation4 + $0x1], 0 }
   0x5   :  { %19 = vsyncpa [#allocation7], 0 }
   0x6   :  { %20 = vsyncpa [#allocation10], 0 }
   0x7   :  { %21 = vsyncpa [#allocation5], 0 }
   0x8   :  { %23 = vsyncpa [#allocation5 + $0x1], 0  ;;  %s5107_s11 = smov 0   ;;  %s5109_s12 = smov 0  }
   0x9   :  { %s5111_s13 = smov 0   ;;  %s5113_s14 = smov 0  }
   0xa LB: > { %5796 = sst [smem:[#allocation16_spill]] %s5031_s11  ;;  %s5128_s8 = sadd.s32 4294967295, %s5043_s14   ;;  %s5043_s14 = sphi %s5113_s14, %s5819_s14   ;;  %s5039_s13 = sphi %s5111_s13, %s5818_s13   ;;  %s5035_s12 = sphi %s5109_s12, %s5817_s12   ;;  %s5031_s11 = sphi %s5107_s11, %s5816_s11  }
   0xb   : > { %s3724_s15 = sadd.s32 4294967294, %s5043_s14   ;;  %p49_p0 = scmp.ne.s32.totalorder %s5035_s12, %s5031_s11 }
   0xc   : > { %p5791_p1 = scmp.eq.s32.totalorder %s5128_s8, 0  ;;  %p247_p3 = scmp.eq.s32.totalorder %s3724_s15, 1 }
   0xd   : > { %p3725_p5 = scmp.ge.s32.totalorder %s5043_s14, 1  ;;  %p254_p7 = scmp.lt.s32.totalorder %s5043_s14, 3 }
   0xe   : > { %p5137_p4 = por %p5791_p1, %p49_p0  ;;  %p5142_p6 = por %p247_p3, %p49_p0 }
   0xf   : > { %p5147_p8 = pnand %p3725_p5, %p254_p7  ;;  %s5045_s19 = smov [#allocation6]  }
  0x10   : > { %s5797_s16 = scalar_select %p5137_p4, 1, 0 }
  0x11   : > { %s5798_s17 = scalar_select %p5142_p6, 1, 0 }
  0x12   : > { %s5800_s18 = scalar_select %p5147_p8, 1, 0 }
  0x13   : > { %5799 = sst [smem:[#allocation17_spill]] %s5798_s17  ;;  %s266_s20 = sshll.u32 %s5045_s19, 4  ;;  %s5151_s20 = int_to_ptr.vmem [resolvable:$true] %s266_s20 }
  0x14   : > { %p4644_p9 = pneg %p5147_p8  ;;  %s5046_s22 = smov [#allocation8]  }
  0x15   : > { %s282_s23 = sshll.u32 %s5046_s22, 4  ;;  %s5047_s24 = smov [#allocation9]   ;;  %s5162_s23 = int_to_ptr.vmem [resolvable:$true] %s282_s23 }
  0x16   : > { %p5158_p11 = pnand %p4644_p9, %p5791_p1  ;;  %s5164_s25 = sshll.u32 %s5047_s24, 4  ;;  %s299_s25 = int_to_ptr.vmem [resolvable:$true] %s5164_s25 }
  0x17   : > { %s4855_s28 = scalar_lea.hbm %s5782_s1, 16384 }
  0x18   : > { %p4856_p12 = scmp.ne.s32.totalorder %s5782_s1, %s4855_s28  ;;  %p5174_p13 = pneg %p5158_p11 }
  0x19   : > { %p4862_p5 = scmp.lt.u32.totalorder %s4855_s28, %s5782_s1 }
  0x1a   : > { %p4858_p0 = pnand %p5174_p13, %p4856_p12 }
  0x1c   : > { %p4859_p3 = pneg %p4858_p0 }
  0x1e   : > { %p4864_p7 = pnand %p4862_p5, %p4859_p3 }
  0x20   : > { %4867 = shalt.err (!%p4864_p7)
}
  0x21   : > { %s4868_s22 = scalar_lea.vmem %s5151_s20, 16384  ;;  %p4876_p2 = scmp.lt.s32.totalorder %s5151_s20, %s5151_s20 }
  0x22   : > { %p4869_p9 = scmp.ne.s32.totalorder %s5151_s20, %s4868_s22  ;;  %p4877_p6 = scmp.lt.s32.totalorder %s4868_s22, %s4868_s22 }
  0x24   : > { %p4871_p10 = pnand %p4869_p9, %p5174_p13  ;;  %p4878_p12 = por %p4877_p6, %p4876_p2 }
  0x26   : > { %p4872_p1 = pneg %p4871_p10 }
  0x28   : > { %p4879_p0 = pnand %p4878_p12, %p4872_p1 }
  0x2a   : > { %4882 = shalt.err (!%p4879_p0)
}
  0x2b   : > { %s5048_s24 = smov 64   ;;  %s5049_s26 = smov 4  }
  0x2c   : > { %4647 = dma.hbm_to_vmem [thread:$0]  (!%p5158_p11), %s5782_s1, 16384, %s5151_s20, [#allocation7], %s5048_s24, %s5048_s24, %s5049_s26  }
  0x2d   : > { %s4883_s15 = scalar_lea.hbm %s5784_s3, 1024 }
  0x2e   : > { %p4884_p1 = scmp.ne.s32.totalorder %s5784_s3, %s4883_s15  ;;  %p4890_p10 = scmp.lt.u32.totalorder %s4883_s15, %s5784_s3 }
  0x30   : > { %p4886_p2 = pnand %p4884_p1, %p5174_p13 }
  0x32   : > { %p4887_p6 = pneg %p4886_p2 }
  0x34   : > { %p4892_p3 = pnand %p4890_p10, %p4887_p6 }
  0x36   : > { %4895 = shalt.err (!%p4892_p3)
}
  0x37   : > { %s4896_s20 = scalar_lea.vmem %s5162_s23, 1024  ;;  %p4904_p12 = scmp.lt.s32.totalorder %s5162_s23, %s5162_s23 }
  0x38   : > { %p4897_p5 = scmp.ne.s32.totalorder %s5162_s23, %s4896_s20  ;;  %p4905_p0 = scmp.lt.s32.totalorder %s4896_s20, %s4896_s20 }
  0x3a   : > { %p4899_p7 = pnand %p4897_p5, %p5174_p13  ;;  %p4906_p1 = por %p4905_p0, %p4904_p12 }
  0x3c   : > { %p4900_p9 = pneg %p4899_p7 }
  0x3e   : > { %p4907_p2 = pnand %p4906_p1, %p4900_p9 }
  0x40   : > { %4910 = shalt.err (!%p4907_p2)
}
  0x41   : > { %4650 = dma.hbm_to_vmem [thread:$0]  (!%p5158_p11), %s5784_s3, 1024, %s5162_s23, [#allocation7], %s5048_s24, %s5048_s24, %s5049_s26  }
  0x42   : > { %s4911_s29 = scalar_lea.hbm %s5786_s5, 1024 }
  0x43   : > { %p4912_p6 = scmp.ne.s32.totalorder %s5786_s5, %s4911_s29  ;;  %p4918_p5 = scmp.lt.u32.totalorder %s4911_s29, %s5786_s5 }
  0x45   : > { %p4914_p10 = pnand %p4912_p6, %p5174_p13 }
  0x47   : > { %p4915_p3 = pneg %p4914_p10 }
  0x49   : > { %p4920_p7 = pnand %p4918_p5, %p4915_p3 }
  0x4b   : > { %4923 = shalt.err (!%p4920_p7)
}
  0x4c   : > { %s4924_s20 = scalar_lea.vmem %s299_s25, 1024  ;;  %p4932_p1 = scmp.lt.s32.totalorder %s299_s25, %s299_s25 }
  0x4d   : > { %p4925_p9 = scmp.ne.s32.totalorder %s299_s25, %s4924_s20  ;;  %p4933_p2 = scmp.lt.s32.totalorder %s4924_s20, %s4924_s20 }
  0x4f   : > { %p4927_p12 = pnand %p4925_p9, %p5174_p13  ;;  %p4934_p4 = por %p4933_p2, %p4932_p1 }
  0x51   : > { %p4928_p0 = pneg %p4927_p12 }
  0x53   : > { %p4935_p8 = pnand %p4934_p4, %p4928_p0 }
  0x55   : > { %4938 = shalt.err (!%p4935_p8)
}
  0x56   : > { %4653 = dma.hbm_to_vmem [thread:$0]  (!%p5158_p11), %s5786_s5, 1024, %s299_s25, [#allocation10], %s5048_s24, %s5048_s24, %s5049_s26  }
  0x57   : > { %s5247_s10 = sadd.s32 1, %s5043_s14   ;;  %s36_s17 = sadd.s32 1, %s5039_s13 }
  0x58   : > { %s33_s21 = ssub.s32 %s5043_s14, %s5247_s10  ;;  %p43_p8 = scmp.ne.s32.totalorder %s5039_s13, %s5035_s12 }
  0x59   : > { %p34_p4 = scmp.eq.s32.totalorder %s33_s21, 0  ;;  %p44_p13 = scmp.eq.s32.totalorder %s5043_s14, 0 }
  0x5a   : > { %p4665_p6 = scmp.lt.s32.totalorder %s5043_s14, 2  ;;  %p5803_p3 = scmp.eq.s32.totalorder %s5128_s8, 1 }
  0x5b   : > { %s5257_s27 = scalar_select %p34_p4, %s5039_s13, %s36_s17  }
  0x5c   : > { %p45_p10 = por %p44_p13, %p43_p8  ;;  %p5261_p5 = por %p5803_p3, %p43_p8 }
  0x5d   : > { %s321_s29 = sand.u32 1, %s5039_s13   ;;  %s4019_s30 = sshll.u32 %s5043_s14, 14 }
  0x5e   : > { %s3730_s25 = sshll.u32 %s321_s29, 10  ;;  %s5270_s19 = scalar_lea.hbm %s5781_s0, %s4019_s30 }
  0x5f   : > { %s325_s22 = scalar_lea.vmem [#allocation3], %s3730_s25  ;;  %p5272_p11 = pnand %p4665_p6, %p45_p10 }
  0x60   : > { %s333_s20 = sshll.u32 %s325_s22, 4  ;;  %s5278_s11 = scalar_lea.sflag [#allocation4], %s321_s29  ;;  %s5276_s20 = int_to_ptr.vmem [resolvable:$true] %s333_s20 }
  0x61   : > { %s4939_s21 = scalar_lea.hbm %s5270_s19, 16384  ;;  %p4941_p9 = pneg %p5272_p11 }
  0x62   : > { %p4940_p7 = scmp.ne.s32.totalorder %s5270_s19, %s4939_s21  ;;  %s4944_s25 = scalar_lea.hbm %s5781_s0, 32768 }
  0x63   : > { %p4945_p1 = scmp.lt.u32.totalorder %s5270_s19, %s5781_s0  ;;  %p4946_p2 = scmp.lt.u32.totalorder %s4944_s25, %s4939_s21 }
  0x64   : > { %p4942_p12 = pnand %p4941_p9, %p4940_p7  ;;  %p4948_p8 = scmp.lt.u32.totalorder %s4939_s21, %s5270_s19 }
  0x65   : > { %p4947_p4 = por %p4946_p2, %p4945_p1 }
  0x66   : > { %p4943_p0 = pneg %p4942_p12 }
  0x67   : > { %p4949_p13 = por %p4948_p8, %p4947_p4 }
  0x69   : > { %p4950_p6 = pnand %p4949_p13, %p4943_p0 }
  0x6b   : > { %4953 = shalt.err (!%p4950_p6)
}
  0x6c   : > { %s4954_s29 = scalar_lea.vmem %s5276_s20, 16384  ;;  %s5050_s22 = smov [#allocation3]  }
  0x6d   : > { %p4955_p10 = scmp.ne.s32.totalorder %s5276_s20, %s4954_s29  ;;  %s4959_s17 = sshll.u32 %s5050_s22, 4  ;;  %s4960_s17 = int_to_ptr.vmem [resolvable:$false] %s4959_s17 }
  0x6e   : > { %s4961_s30 = scalar_lea.vmem %s4960_s17, 32768  ;;  %p4962_p12 = scmp.lt.s32.totalorder %s5276_s20, %s4960_s17 }
  0x6f   : > { %p4957_p3 = pnand %p4955_p10, %p4941_p9  ;;  %p4963_p1 = scmp.lt.s32.totalorder %s4961_s30, %s4954_s29 }
  0x71   : > { %p4958_p7 = pneg %p4957_p3  ;;  %p4964_p2 = por %p4963_p1, %p4962_p12 }
  0x73   : > { %p4965_p4 = pnand %p4964_p2, %p4958_p7 }
  0x75   : > { %4968 = shalt.err (!%p4965_p4)
}
  0x76   : > { %s5051_s21 = smov 1024   ;;  %p5806_p9 = scmp.ne.s32.totalorder %s5800_s18, 0 }
  0x77   : > { %4657 = dma.hbm_to_vmem [thread:$0]  (!%p5272_p11), %s5270_s19, 16384, %s5276_s20, %s5278_s11, %s5051_s21, %s5051_s21, %s5048_s24  }
  0x78   : > { %345 = sbr.rel (%p5806_p9) target bundleno = 1275 (0x4fb), region = 56  ;;  %s5310_s25 = sand.u32 (!%p5806_p9), 1, %s5035_s12  }
  0x79   : > { %s3735_s26 = sshll.u32 (!%p5806_p9), %s5310_s25, 10  ;;  %s348_s15 = scalar_lea.sflag (!%p5806_p9), [#allocation4], %s5310_s25 }
  0x7a   : > { %s5314_s29 = scalar_lea.vmem (!%p5806_p9), [#allocation3], %s3735_s26  ;;  %p5807_p0 = scmp.ne.s32.totalorder (!%p5806_p9), %s5797_s16, 0 }
  0x7f   : > { %5014 = dma.done.wait (%p5807_p0), %s348_s15, 16384  }
  0x80   : > { %5016 = vsyncadd (%p5807_p0), %s348_s15, 4294950912  ;;  %p5808_p11 = scmp.eq.s32.totalorder %s5128_s8, 0 }
  0x82   : > { %5018 = dma.done.wait (%p5808_p11), [#allocation7], 17408   ;;  %p5809_p8 = pmov %p5808_p11 }
  0x84   : > { %5020 = vsyncadd (%p5809_p8), [#allocation7], 4294949888  ;;  %p5810_p13 = pmov %p5809_p8 }
  0x85   : > { %p5811_p6 = pmov %p5809_p8 }
  0x86   : > { %5022 = dma.done.wait (%p5810_p13), [#allocation10], 1024  }
  0x87   : > { %5024 = vsyncadd (%p5811_p6), [#allocation10], 4294966272  ;;  %v4711_v1 = vld [vmem:[#allocation6 + $0x40] sm:$0xff]   ;;  %v4715_v5 = vld [vmem:[#allocation6 + $0x48] sm:$0xff]   ;;  %vm3514_vm0 = vcmask 130112   ;;  %vm3521_vm1 = vcmask 195712  }
  0x88   : > { %v4712_v2 = vld [vmem:[#allocation6 + $0xc0] sm:$0xff]   ;;  %4020 = vmatprep.subr.bf16.mxu0 %v4711_v1  ;;  %v4716_v6 = vld [vmem:[#allocation6 + $0xc8] sm:$0xff]   ;;  %v4719_v9 = vld [vmem:[#allocation6 + $0x50] sm:$0xff]   ;;  %vm3528_vm2 = vcmask 261312   ;;  %vm3535_vm3 = vcmask 326912   ;;  %vm3542_vm4 = vcmask 392512  }
  0x89   : > { %v4713_v3 = vld [vmem:[#allocation6] sm:$0xff]   ;;  %4084 = vmatprep.subr.bf16.mxu1 %v4712_v2  ;;  %v4717_v7 = vld [vmem:[#allocation6 + $0x8] sm:$0xff]   ;;  %v4720_v10 = vld [vmem:[#allocation6 + $0xd0] sm:$0xff]   ;;  %vm3549_vm5 = vcmask 458112   ;;  %vm3556_vm6 = vcmask 523712   ;;  %vm3563_vm7 = vcmask 589312  }
  0x8a   : > { %v4714_v4 = vld [vmem:[#allocation6 + $0x80] sm:$0xff]   ;;  %4021 = vmatpush3.bf16.msra.mxu0 %v4713_v3  ;;  %v4718_v8 = vld [vmem:[#allocation6 + $0x88] sm:$0xff]   ;;  %v4721_v11 = vld [vmem:[#allocation6 + $0x10] sm:$0xff]   ;;  %vm3570_vm8 = vcmask 654912   ;;  %vm3577_vm9 = vcmask 720512   ;;  %vm3584_vm10 = vcmask 786112  }
  0x8b   : > { %4085 = vmatpush3.bf16.msra.mxu1 %v4714_v4  ;;  %4022 = vmatprep.subr.bf16.mxu0 %v4715_v5  ;;  %v4722_v12 = vld [vmem:[#allocation6 + $0x90] sm:$0xff]   ;;  %v4723_v13 = vld [vmem:[#allocation6 + $0x58] sm:$0xff]   ;;  %v4727_v17 = vld [vmem:[#allocation6 + $0x60] sm:$0xff]   ;;  %vm3591_vm11 = vcmask 851712   ;;  %vm3598_vm12 = vcmask 917312   ;;  %vm3605_vm13 = vcmask 982912  }
  0x8c   : > { %4086 = vmatprep.subr.bf16.mxu1 %v4716_v6  ;;  %v4724_v14 = vld [vmem:[#allocation6 + $0xd8] sm:$0xff]   ;;  %v4728_v18 = vld [vmem:[#allocation6 + $0xe0] sm:$0xff]   ;;  %v4731_v21 = vld [vmem:[#allocation6 + $0x68] sm:$0xff]   ;;  %s4015_s17 = sshll.u32 %s5128_s8, 4  ;;  %s396_s30 = scalar_lea.vmem [#allocation11], %s5310_s25  ;;  %vm3612_vm14 = vcmask 1048512  }
  0x8d   : > { %v4725_v15 = vld [vmem:[#allocation6 + $0x18] sm:$0xff]   ;;  %v4729_v19 = vld [vmem:[#allocation6 + $0x20] sm:$0xff]   ;;  %v4732_v22 = vld [vmem:[#allocation6 + $0xe8] sm:$0xff]   ;;  %s3629_s21 = sshll.u32 %s396_s30, 4  ;;  %s3617_s8 = scalar_lea.sflag [#allocation5], %s5310_s25  ;;  %s5739_s21 = int_to_ptr.vmem [resolvable:$true] %s3629_s21 }
  0x8e   : > { %4023 = vmatpush3.bf16.msra.mxu0 %v4717_v7  ;;  %v4726_v16 = vld [vmem:[#allocation6 + $0x98] sm:$0xff]   ;;  %v4730_v20 = vld [vmem:[#allocation6 + $0xa0] sm:$0xff]   ;;  %v4733_v23 = vld [vmem:[#allocation6 + $0x28] sm:$0xff]   ;;  %s4969_s16 = scalar_lea.vmem %s5739_s21, 16  ;;  %s5053_s18 = smov [#allocation11]  }
  0x8f   : > { %4087 = vmatpush3.bf16.msra.mxu1 %v4718_v8  ;;  %4024 = vmatprep.subr.bf16.mxu0 %v4719_v9  ;;  %v4734_v24 = vld [vmem:[#allocation6 + $0xa8] sm:$0xff]   ;;  %v4735_v25 = vld [vmem:[#allocation6 + $0x70] sm:$0xff]   ;;  %v4739_v29 = vld [vmem:[#allocation6 + $0x78] sm:$0xff]   ;;  %p4970_p10 = scmp.ne.s32.totalorder %s5739_s21, %s4969_s16  ;;  %s4973_s24 = sshll.u32 %s5053_s18, 4  ;;  %s4974_s24 = int_to_ptr.vmem [resolvable:$false] %s4973_s24 }
  0x90   : > { %4088 = vmatprep.subr.bf16.mxu1 %v4720_v10  ;;  %v4736_v26 = vld [vmem:[#allocation6 + $0xf0] sm:$0xff]   ;;  %v4740_v30 = vld [vmem:[#allocation6 + $0xf8] sm:$0xff]   ;;  %v399_v33 = vld [vmem:[%s5314_s29] sm:$0xff]  ;;  %s4975_s19 = scalar_lea.vmem %s4974_s24, 32  ;;  %p4976_p12 = scmp.lt.s32.totalorder %s5739_s21, %s4974_s24 }
  0x91   : > { %v4737_v27 = vld [vmem:[#allocation6 + $0x30] sm:$0xff]   ;;  %v4741_v31 = vld [vmem:[#allocation6 + $0x38] sm:$0xff]   ;;  %v407_v34 = vld [vmem:[%s5314_s29 + $0x40] sm:$0xff]  ;;  %p4971_p3 = pnand %p4970_p10, %p5261_p5  ;;  %p4977_p1 = scmp.lt.s32.totalorder %s4975_s19, %s4969_s16 }
  0x92   : > { %4025 = vmatpush3.bf16.msra.mxu0 %v4721_v11  ;;  %v4738_v28 = vld [vmem:[#allocation6 + $0xb0] sm:$0xff]   ;;  %v4742_v32 = vld [vmem:[#allocation6 + $0xb8] sm:$0xff]   ;;  %v400_v35 = vld [vmem:[%s5314_s29 + $0x8] sm:$0xff]  ;;  %v3740_v36 = vcombine.low %v399_v33, %v407_v34  ;;  %v3741_v37 = vcombine.high %v399_v33, %v407_v34 }
  0x93   : > { %4089 = vmatpush3.bf16.msra.mxu1 %v4722_v12  ;;  %4026 = vmatprep.subr.bf16.mxu0 %v4723_v13  ;;  %v408_v38 = vld [vmem:[%s5314_s29 + $0x48] sm:$0xff]  ;;  %v4743_v41 = vld [vmem:[#allocation6 + $0x140] sm:$0xff]   ;;  %v4751_v63 = vld [vmem:[#allocation6 + $0x150] sm:$0xff]   ;;  %p4972_p7 = pneg %p4971_p3  ;;  %p4978_p2 = por %p4977_p1, %p4976_p12 }
  0x94   : > { %4090 = vmatprep.subr.bf16.mxu1 %v4724_v14  ;;  %v3742_v39 = vcombine.low %v400_v35, %v408_v38  ;;  %v3743_v40 = vcombine.high %v400_v35, %v408_v38  ;;  %2230 = vmatprep.mubr.bf16.mxu0 %v3741_v37  ;;  %v4744_v42 = vld [vmem:[#allocation6 + $0x100] sm:$0xff]   ;;  %v416_v48 = vld [vmem:[%s5314_s29 + $0x88] sm:$0xff]  ;;  %v4752_v0 = vld [vmem:[#allocation6 + $0x110] sm:$0xff]  }
  0x95   : > { %v4745_v43 = vld [vmem:[#allocation6 + $0x1c0] sm:$0xff]   ;;  %v424_v49 = vld [vmem:[%s5314_s29 + $0xc8] sm:$0xff]  ;;  %v4753_v1 = vld [vmem:[#allocation6 + $0x1d0] sm:$0xff]   ;;  %p4979_p4 = pnand %p4978_p2, %p4972_p7 }
  0x96   : > { %4027 = vmatpush3.bf16.msra.mxu0 %v4725_v15  ;;  %2327 = vmatprep.mubr.bf16.mxu1 %v3743_v40  ;;  %v4746_v44 = vld [vmem:[#allocation6 + $0x180] sm:$0xff]   ;;  %v3759_v50 = vcombine.high %v416_v48, %v424_v49  ;;  %v4747_v51 = vld [vmem:[#allocation6 + $0x148] sm:$0xff]   ;;  %v3758_v54 = vcombine.low %v416_v48, %v424_v49  ;;  %v4754_v2 = vld [vmem:[#allocation6 + $0x190] sm:$0xff]  }
  0x97   : > { %4091 = vmatpush3.bf16.msra.mxu1 %v4726_v16  ;;  %4028 = vmatprep.subr.bf16.mxu0 %v4727_v17  ;;  %v415_v45 = vld [vmem:[%s5314_s29 + $0x80] sm:$0xff]  ;;  %v4748_v53 = vld [vmem:[#allocation6 + $0x108] sm:$0xff]   ;;  %v4755_v11 = vld [vmem:[#allocation6 + $0x158] sm:$0xff]  }
  0x98   : > { %4092 = vmatprep.subr.bf16.mxu1 %v4728_v18  ;;  %v423_v46 = vld [vmem:[%s5314_s29 + $0xc0] sm:$0xff]  ;;  %v4749_v55 = vld [vmem:[#allocation6 + $0x1c8] sm:$0xff]   ;;  %v4756_v12 = vld [vmem:[#allocation6 + $0x118] sm:$0xff]  }
  0x99   : > { %v3757_v47 = vcombine.high %v415_v45, %v423_v46  ;;  %v3756_v52 = vcombine.low %v415_v45, %v423_v46  ;;  %v4750_v56 = vld [vmem:[#allocation6 + $0x188] sm:$0xff]   ;;  %v431_v57 = vld [vmem:[%s5314_s29 + $0x100] sm:$0xff]  ;;  %v4757_v13 = vld [vmem:[#allocation6 + $0x1d8] sm:$0xff]  }
  0x9a   : > { %4029 = vmatpush3.bf16.msra.mxu0 %v4729_v19  ;;  %v439_v58 = vld [vmem:[%s5314_s29 + $0x140] sm:$0xff]  ;;  %v432_v59 = vld [vmem:[%s5314_s29 + $0x108] sm:$0xff]  ;;  %v4758_v14 = vld [vmem:[#allocation6 + $0x198] sm:$0xff]  }
  0x9b   : > { %4093 = vmatpush3.bf16.msra.mxu1 %v4730_v20  ;;  %4030 = vmatprep.subr.bf16.mxu0 %v4731_v21  ;;  %v440_v60 = vld [vmem:[%s5314_s29 + $0x148] sm:$0xff]  ;;  %v3773_v61 = vcombine.high %v431_v57, %v439_v58  ;;  %v3772_v3 = vcombine.low %v431_v57, %v439_v58  ;;  %v447_v4 = vld [vmem:[%s5314_s29 + $0x180] sm:$0xff]  ;;  %v4768_v40 = vld [vmem:[#allocation6 + $0x130] sm:$0xff]  }
  0x9c   : > { %4094 = vmatprep.subr.bf16.mxu1 %v4732_v22  ;;  %v3775_v62 = vcombine.high %v432_v59, %v440_v60  ;;  %v455_v5 = vld [vmem:[%s5314_s29 + $0x1c0] sm:$0xff]  ;;  %v448_v6 = vld [vmem:[%s5314_s29 + $0x188] sm:$0xff]  ;;  %v3774_v7 = vcombine.low %v432_v59, %v440_v60  ;;  %v4772_v49 = vld [vmem:[#allocation6 + $0x138] sm:$0xff]  }
  0x9d   : > { %v3789_v8 = vcombine.high %v447_v4, %v455_v5  ;;  %v456_v9 = vld [vmem:[%s5314_s29 + $0x1c8] sm:$0xff]  ;;  %v463_v15 = vld [vmem:[%s5314_s29 + $0x200] sm:$0xff]  ;;  %v3788_v20 = vcombine.low %v447_v4, %v455_v5  ;;  %v410_v4 = vld [vmem:[%s5314_s29 + $0x58] sm:$0xff] }
  0x9e   : > { %4031 = vmatpush3.bf16.msra.mxu0 %v4733_v23  ;;  %v3791_v10 = vcombine.high %v448_v6, %v456_v9  ;;  %v471_v16 = vld [vmem:[%s5314_s29 + $0x240] sm:$0xff]  ;;  %v464_v17 = vld [vmem:[%s5314_s29 + $0x208] sm:$0xff]  ;;  %v3790_v22 = vcombine.low %v448_v6, %v456_v9  ;;  %v417_v9 = vld [vmem:[%s5314_s29 + $0x90] sm:$0xff] }
  0x9f   : > { %4095 = vmatpush3.bf16.msra.mxu1 %v4734_v24  ;;  %4032 = vmatprep.subr.bf16.mxu0 %v4735_v25  ;;  %v472_v18 = vld [vmem:[%s5314_s29 + $0x248] sm:$0xff]  ;;  %v4759_v19 = vld [vmem:[#allocation6 + $0x160] sm:$0xff]   ;;  %v3805_v23 = vcombine.high %v463_v15, %v471_v16  ;;  %v3804_v35 = vcombine.low %v463_v15, %v471_v16 }
  0xa0   : > { %4096 = vmatprep.subr.bf16.mxu1 %v4736_v26  ;;  %v4760_v21 = vld [vmem:[#allocation6 + $0x120] sm:$0xff]   ;;  %v3807_v25 = vcombine.high %v464_v17, %v472_v18  ;;  %v4765_v33 = vld [vmem:[#allocation6 + $0x1e8] sm:$0xff]  }
  0xa1   : > { %v4761_v24 = vld [vmem:[#allocation6 + $0x1e0] sm:$0xff]   ;;  %v4766_v34 = vld [vmem:[#allocation6 + $0x1a8] sm:$0xff]  }
  0xa2   : > { %4033 = vmatpush3.bf16.msra.mxu0 %v4737_v27  ;;  %v4762_v26 = vld [vmem:[#allocation6 + $0x1a0] sm:$0xff]   ;;  %v496_v45 = vld [vmem:[%s5314_s29 + $0x308] sm:$0xff] }
  0xa3   : > { %4097 = vmatpush3.bf16.msra.mxu1 %v4738_v28  ;;  %4034 = vmatprep.subr.bf16.mxu0 %v4739_v29  ;;  %v479_v27 = vld [vmem:[%s5314_s29 + $0x280] sm:$0xff]  ;;  %v4763_v29 = vld [vmem:[#allocation6 + $0x168] sm:$0xff]  }
  0xa4   : > { %4098 = vmatprep.subr.bf16.mxu1 %v4740_v30  ;;  %v487_v28 = vld [vmem:[%s5314_s29 + $0x2c0] sm:$0xff]  ;;  %v480_v30 = vld [vmem:[%s5314_s29 + $0x288] sm:$0xff] }
  0xa5   : > { %v3821_v37 = vcombine.high %v479_v27, %v487_v28  ;;  %v504_v46 = vld [vmem:[%s5314_s29 + $0x348] sm:$0xff]  ;;  %v3820_v48 = vcombine.low %v479_v27, %v487_v28  ;;  %v4775_v57 = vld [vmem:[#allocation6 + $0x240] sm:$0xff]   ;;  %v4783_v27 = vld [vmem:[#allocation6 + $0x250] sm:$0xff]  }
  0xa6   : > { %4035 = vmatpush3.bf16.msra.mxu0 %v4741_v31  ;;  %v488_v31 = vld [vmem:[%s5314_s29 + $0x2c8] sm:$0xff]  ;;  %v4777_v59 = vld [vmem:[#allocation6 + $0x2c0] sm:$0xff]   ;;  %v4785_v28 = vld [vmem:[#allocation6 + $0x2d0] sm:$0xff]  }
  0xa7   : > { %4099 = vmatpush3.bf16.msra.mxu1 %v4742_v32  ;;  %4148 = vmatprep.subr.bf16.mxu0 %v4743_v41  ;;  %v4764_v32 = vld [vmem:[#allocation6 + $0x128] sm:$0xff]   ;;  %v3823_v38 = vcombine.high %v480_v30, %v488_v31  ;;  %v4769_v41 = vld [vmem:[#allocation6 + $0x1f0] sm:$0xff]   ;;  %v4778_v16 = vld [vmem:[#allocation6 + $0x280] sm:$0xff]  }
  0xa8   : > { %4212 = vmatprep.subr.bf16.mxu1 %v4745_v43  ;;  %v503_v43 = vld [vmem:[%s5314_s29 + $0x340] sm:$0xff]  ;;  %v512_v58 = vld [vmem:[%s5314_s29 + $0x388] sm:$0xff] }
  0xa9   : > { %2231 = vmatmul.mubr.bf16.vlgmr.msra.gmra.mrb[0].mxu0 %v3740_v36  ;;  %v3806_v36 = vcombine.low %v464_v17, %v472_v18  ;;  %v520_v60 = vld [vmem:[%s5314_s29 + $0x3c8] sm:$0xff] }
  0xaa   : > { %2328 = vmatmul.mubr.bf16.vlgmr.msra.gmra.mrb[0].mxu1 %v3742_v39  ;;  %4149 = vmatpush3.bf16.msra.mxu0 %v4744_v42  ;;  %v4767_v39 = vld [vmem:[#allocation6 + $0x170] sm:$0xff]   ;;  %v495_v42 = vld [vmem:[%s5314_s29 + $0x300] sm:$0xff]  ;;  %v3854_v6 = vcombine.low %v512_v58, %v520_v60  ;;  %v4779_v18 = vld [vmem:[#allocation6 + $0x248] sm:$0xff]  }
  0xab   : > { %4213 = vmatpush3.bf16.msra.mxu1 %v4746_v44  ;;  %2238 = vmatprep.mubr.bf16.mxu0 %v3757_v47  ;;  %v4770_v44 = vld [vmem:[#allocation6 + $0x1b0] sm:$0xff]   ;;  %v4771_v47 = vld [vmem:[#allocation6 + $0x178] sm:$0xff]  }
  0xac   : > { %2335 = vmatprep.mubr.bf16.mxu1 %v3759_v50  ;;  %4150 = vmatprep.subr.bf16.mxu0 %v4747_v51  ;;  %v3822_v50 = vcombine.low %v480_v30, %v488_v31  ;;  %v3837_v51 = vcombine.high %v495_v42, %v503_v43 }
  0xad   : > { %4214 = vmatprep.subr.bf16.mxu1 %v4749_v55  ;;  %v511_v55 = vld [vmem:[%s5314_s29 + $0x380] sm:$0xff] }
  0xae   : > { %4151 = vmatpush3.bf16.msra.mxu0 %v4748_v53  ;;  %v3839_v53 = vcombine.high %v496_v45, %v504_v46 }
  0xaf   : > { %4215 = vmatpush3.bf16.msra.mxu1 %v4750_v56  ;;  %4152 = vmatprep.subr.bf16.mxu0 %v4751_v63  ;;  %v519_v56 = vld [vmem:[%s5314_s29 + $0x3c0] sm:$0xff] }
  0xb0   : > { %4216 = vmatprep.subr.bf16.mxu1 %v4753_v1  ;;  %v3853_v63 = vcombine.high %v511_v55, %v519_v56  ;;  %v401_v1 = vld [vmem:[%s5314_s29 + $0x10] sm:$0xff]  ;;  %v3852_v5 = vcombine.low %v511_v55, %v519_v56  ;;  %v466_v55 = vld [vmem:[%s5314_s29 + $0x218] sm:$0xff] }
  0xb1   : > { %2239 = vmatmul.mubr.bf16.gmra.mrb[4].mxu0 %v3756_v52  ;;  %v4773_v52 = vld [vmem:[#allocation6 + $0x1f8] sm:$0xff]  }
  0xb2   : > { %2336 = vmatmul.mubr.bf16.gmra.mrb[4].mxu1 %v3758_v54  ;;  %2246 = vmatprep.mubr.bf16.mxu0 %v3773_v61  ;;  %v4774_v54 = vld [vmem:[#allocation6 + $0x1b8] sm:$0xff]   ;;  %v3836_v61 = vcombine.low %v495_v42, %v503_v43  ;;  %v4791_v43 = vld [vmem:[#allocation6 + $0x260] sm:$0xff]  }
  0xb3   : > { %2343 = vmatprep.mubr.bf16.mxu1 %v3775_v62  ;;  %4153 = vmatpush3.bf16.msra.mxu0 %v4752_v0  ;;  %v3838_v62 = vcombine.low %v496_v45, %v504_v46  ;;  %v3855_v0 = vcombine.high %v512_v58, %v520_v60  ;;  %v4790_v42 = vld [vmem:[#allocation6 + $0x298] sm:$0xff]   ;;  %v4793_v45 = vld [vmem:[#allocation6 + $0x2e0] sm:$0xff]   ;;  %v4798_v58 = vld [vmem:[#allocation6 + $0x2a8] sm:$0xff]  }
  0xb4   : > { %4217 = vmatpush3.bf16.msra.mxu1 %v4754_v2  ;;  %4154 = vmatprep.subr.bf16.mxu0 %v4755_v11  ;;  %v409_v2 = vld [vmem:[%s5314_s29 + $0x50] sm:$0xff]  ;;  %v474_v56 = vld [vmem:[%s5314_s29 + $0x258] sm:$0xff] }
  0xb5   : > { %4218 = vmatprep.subr.bf16.mxu1 %v4757_v13  ;;  %v3744_v11 = vcombine.low %v401_v1, %v409_v2  ;;  %v418_v13 = vld [vmem:[%s5314_s29 + $0x98] sm:$0xff] }
  0xb7   : > { %4155 = vmatpush3.bf16.msra.mxu0 %v4756_v12  ;;  %v4776_v12 = vld [vmem:[#allocation6 + $0x200] sm:$0xff]  }
  0xb8   : > { %4219 = vmatpush3.bf16.msra.mxu1 %v4758_v14  ;;  %4156 = vmatprep.subr.bf16.mxu0 %v4759_v19  ;;  %v426_v14 = vld [vmem:[%s5314_s29 + $0xd8] sm:$0xff] }
  0xb9   : > { %2247 = vmatmul.mubr.bf16.gmra.mrb[8].mxu0 %v3772_v3  ;;  %4220 = vmatprep.subr.bf16.mxu1 %v4761_v24  ;;  %v402_v3 = vld [vmem:[%s5314_s29 + $0x18] sm:$0xff]  ;;  %v3763_v19 = vcombine.high %v418_v13, %v426_v14  ;;  %v441_v24 = vld [vmem:[%s5314_s29 + $0x150] sm:$0xff]  ;;  %v3762_v30 = vcombine.low %v418_v13, %v426_v14  ;;  %v4809_v13 = vld [vmem:[#allocation6 + $0x3c0] sm:$0xff]   ;;  %v3810_v14 = vcombine.low %v466_v55, %v474_v56 }
  0xba   : > { %2344 = vmatmul.mubr.bf16.gmra.mrb[8].mxu1 %v3774_v7  ;;  %2254 = vmatprep.mubr.bf16.mxu0 %v3789_v8  ;;  %v3745_v7 = vcombine.high %v401_v1, %v409_v2  ;;  %v3747_v8 = vcombine.high %v402_v3, %v410_v4  ;;  %v3746_v15 = vcombine.low %v402_v3, %v410_v4  ;;  %v4800_v1 = vld [vmem:[#allocation6 + $0x230] sm:$0xff]   ;;  %v4803_v3 = vld [vmem:[#allocation6 + $0x278] sm:$0xff]  }
  0xbb   : > { %2351 = vmatprep.mubr.bf16.mxu1 %v3791_v10  ;;  %4157 = vmatpush3.bf16.msra.mxu0 %v4760_v21  ;;  %v425_v10 = vld [vmem:[%s5314_s29 + $0xd0] sm:$0xff]  ;;  %v4781_v21 = vld [vmem:[#allocation6 + $0x2c8] sm:$0xff]  }
  0xbc   : > { %4221 = vmatpush3.bf16.msra.mxu1 %v4762_v26  ;;  %4158 = vmatprep.subr.bf16.mxu0 %v4763_v29  ;;  %v3761_v17 = vcombine.high %v417_v9, %v425_v10  ;;  %v442_v26 = vld [vmem:[%s5314_s29 + $0x158] sm:$0xff]  ;;  %v3760_v29 = vcombine.low %v417_v9, %v425_v10  ;;  %v4802_v2 = vld [vmem:[#allocation6 + $0x2b0] sm:$0xff]  }
  0xbd   : > { %4222 = vmatprep.subr.bf16.mxu1 %v4765_v33  ;;  %v4784_v33 = vld [vmem:[#allocation6 + $0x210] sm:$0xff]   ;;  %v4804_v9 = vld [vmem:[#allocation6 + $0x238] sm:$0xff]  }
  0xbe   : > { %v481_v4 = vld [vmem:[%s5314_s29 + $0x290] sm:$0xff]  ;;  %v4806_v10 = vld [vmem:[#allocation6 + $0x2b8] sm:$0xff]  }
  0xbf   : > { %4159 = vmatpush3.bf16.msra.mxu0 %v4764_v32 }
  0xc0   : > { %4223 = vmatpush3.bf16.msra.mxu1 %v4766_v34  ;;  %4160 = vmatprep.subr.bf16.mxu0 %v4767_v39  ;;  %v4786_v34 = vld [vmem:[#allocation6 + $0x290] sm:$0xff]   ;;  %v450_v39 = vld [vmem:[%s5314_s29 + $0x198] sm:$0xff] }
  0xc1   : > { %2255 = vmatmul.mubr.bf16.gmra.mrb[12].mxu0 %v3788_v20  ;;  %4224 = vmatprep.subr.bf16.mxu1 %v4769_v41  ;;  %v4780_v20 = vld [vmem:[#allocation6 + $0x208] sm:$0xff]   ;;  %v4788_v41 = vld [vmem:[#allocation6 + $0x218] sm:$0xff]  }
  0xc2   : > { %2352 = vmatmul.mubr.bf16.gmra.mrb[12].mxu1 %v3790_v22  ;;  %2262 = vmatprep.mubr.bf16.mxu0 %v3805_v23  ;;  %v4782_v22 = vld [vmem:[#allocation6 + $0x288] sm:$0xff]   ;;  %v433_v23 = vld [vmem:[%s5314_s29 + $0x110] sm:$0xff] }
  0xc3   : > { %2359 = vmatprep.mubr.bf16.mxu1 %v3807_v25  ;;  %4161 = vmatpush3.bf16.msra.mxu0 %v4768_v40  ;;  %v434_v25 = vld [vmem:[%s5314_s29 + $0x118] sm:$0xff]  ;;  %v3777_v31 = vcombine.high %v433_v23, %v441_v24 }
  0xc4   : > { %4225 = vmatpush3.bf16.msra.mxu1 %v4770_v44  ;;  %4162 = vmatprep.subr.bf16.mxu0 %v4771_v47  ;;  %v3779_v32 = vcombine.high %v434_v25, %v442_v26  ;;  %v458_v40 = vld [vmem:[%s5314_s29 + $0x1d8] sm:$0xff]  ;;  %v3776_v44 = vcombine.low %v433_v23, %v441_v24  ;;  %v3778_v46 = vcombine.low %v434_v25, %v442_v26  ;;  %v513_v25 = vld [vmem:[%s5314_s29 + $0x390] sm:$0xff] }
  0xc5   : > { %4226 = vmatprep.subr.bf16.mxu1 %v4773_v52  ;;  %v465_v52 = vld [vmem:[%s5314_s29 + $0x210] sm:$0xff] }
  0xc6   : > { %v521_v26 = vld [vmem:[%s5314_s29 + $0x3d0] sm:$0xff] }
  0xc7   : > { %4163 = vmatpush3.bf16.msra.mxu0 %v4772_v49  ;;  %v3795_v49 = vcombine.high %v450_v39, %v458_v40 }
  0xc8   : > { %4227 = vmatpush3.bf16.msra.mxu1 %v4774_v54  ;;  %4276 = vmatprep.subr.bf16.mxu0 %v4775_v57  ;;  %v473_v54 = vld [vmem:[%s5314_s29 + $0x250] sm:$0xff]  ;;  %v4796_v57 = vld [vmem:[#allocation6 + $0x228] sm:$0xff]  }
  0xc9   : > { %2263 = vmatmul.mubr.bf16.gmra.mrb[16].mxu0 %v3804_v35  ;;  %4340 = vmatprep.subr.bf16.mxu1 %v4777_v59  ;;  %v4787_v35 = vld [vmem:[#allocation6 + $0x258] sm:$0xff]   ;;  %v4799_v59 = vld [vmem:[#allocation6 + $0x270] sm:$0xff]  }
  0xca   : > { %2360 = vmatmul.mubr.bf16.gmra.mrb[16].mxu1 %v3806_v36  ;;  %2270 = vmatprep.mubr.bf16.mxu0 %v3821_v37  ;;  %v449_v36 = vld [vmem:[%s5314_s29 + $0x190] sm:$0xff] }
  0xcb   : > { %2367 = vmatprep.mubr.bf16.mxu1 %v3823_v38  ;;  %v457_v37 = vld [vmem:[%s5314_s29 + $0x1d0] sm:$0xff]  ;;  %v4789_v38 = vld [vmem:[#allocation6 + $0x2d8] sm:$0xff]  }
  0xcc   : > { %v3793_v47 = vcombine.high %v449_v36, %v457_v37  ;;  %v3792_v60 = vcombine.low %v449_v36, %v457_v37  ;;  %v412_v36 = vld [vmem:[%s5314_s29 + $0x68] sm:$0xff]  ;;  %v3856_v37 = vcombine.low %v513_v25, %v521_v26 }
  0xd1   : > { %2271 = vmatmul.mubr.bf16.gmra.mrb[20].mxu0 %v3820_v48  ;;  %v4792_v48 = vld [vmem:[#allocation6 + $0x220] sm:$0xff]  }
  0xd2   : > { %2368 = vmatmul.mubr.bf16.gmra.mrb[20].mxu1 %v3822_v50  ;;  %2278 = vmatprep.mubr.bf16.mxu0 %v3837_v51  ;;  %v4794_v50 = vld [vmem:[#allocation6 + $0x2a0] sm:$0xff]   ;;  %v4795_v51 = vld [vmem:[#allocation6 + $0x268] sm:$0xff]  }
  0xd3   : > { %2375 = vmatprep.mubr.bf16.mxu1 %v3839_v53  ;;  %v4797_v53 = vld [vmem:[#allocation6 + $0x2e8] sm:$0xff]  }
  0xd9   : > { %2279 = vmatmul.mubr.bf16.gmra.mrb[24].mxu0 %v3836_v61  ;;  %v4801_v61 = vld [vmem:[#allocation6 + $0x2f0] sm:$0xff]  }
  0xda   : > { %2376 = vmatmul.mubr.bf16.gmra.mrb[24].mxu1 %v3838_v62  ;;  %2286 = vmatprep.mubr.bf16.mxu0 %v3853_v63  ;;  %v3794_v62 = vcombine.low %v450_v39, %v458_v40  ;;  %v3809_v63 = vcombine.high %v465_v52, %v473_v54 }
  0xdb   : > { %2383 = vmatprep.mubr.bf16.mxu1 %v3855_v0  ;;  %v3811_v0 = vcombine.high %v466_v55, %v474_v56  ;;  %v435_v55 = vld [vmem:[%s5314_s29 + $0x120] sm:$0xff] }
  0xdc   : > { %v443_v56 = vld [vmem:[%s5314_s29 + $0x160] sm:$0xff] }
  0xe1   : > { %2287 = vmatmul.mubr.bf16.gmra.mrb[28].mxu0 %v3852_v5  ;;  %v489_v5 = vld [vmem:[%s5314_s29 + $0x2d0] sm:$0xff] }
  0xe2   : > { %2384 = vmatmul.mubr.bf16.gmra.mrb[28].mxu1 %v3854_v6  ;;  %2424 = vmatprep.mubr.bf16.mxu0 %v3745_v7  ;;  %v4805_v6 = vld [vmem:[#allocation6 + $0x2f8] sm:$0xff]  }
  0xe3   : > { %2521 = vmatprep.mubr.bf16.mxu1 %v3747_v8  ;;  %v482_v7 = vld [vmem:[%s5314_s29 + $0x298] sm:$0xff] }
  0xe4   : > { %v490_v8 = vld [vmem:[%s5314_s29 + $0x2d8] sm:$0xff] }
  0xe9   : > { %2425 = vmatmul.mubr.bf16.vlgmr.msra.gmra.mrb[32].mxu0 %v3744_v11  ;;  %v4807_v11 = vld [vmem:[#allocation6 + $0x340] sm:$0xff]  }
  0xea   : > { %2522 = vmatmul.mubr.bf16.vlgmr.msra.gmra.mrb[32].mxu1 %v3746_v15  ;;  %4277 = vmatpush3.bf16.msra.mxu0 %v4776_v12  ;;  %v3808_v12 = vcombine.low %v465_v52, %v473_v54  ;;  %v3825_v15 = vcombine.high %v481_v4, %v489_v5  ;;  %v4813_v52 = vld [vmem:[#allocation6 + $0x3c8] sm:$0xff]  }
  0xeb   : > { %4341 = vmatpush3.bf16.msra.mxu1 %v4778_v16  ;;  %2432 = vmatprep.mubr.bf16.mxu0 %v3761_v17  ;;  %v3827_v16 = vcombine.high %v482_v7, %v490_v8  ;;  %v497_v17 = vld [vmem:[%s5314_s29 + $0x310] sm:$0xff]  ;;  %v4814_v54 = vld [vmem:[#allocation6 + $0x388] sm:$0xff]  }
  0xec   : > { %2529 = vmatprep.mubr.bf16.mxu1 %v3763_v19  ;;  %4278 = vmatprep.subr.bf16.mxu0 %v4779_v18  ;;  %v505_v18 = vld [vmem:[%s5314_s29 + $0x350] sm:$0xff]  ;;  %v498_v19 = vld [vmem:[%s5314_s29 + $0x318] sm:$0xff] }
  0xed   : > { %4342 = vmatprep.subr.bf16.mxu1 %v4781_v21  ;;  %v3824_v21 = vcombine.low %v481_v4, %v489_v5  ;;  %v3841_v23 = vcombine.high %v497_v17, %v505_v18  ;;  %v4821_v4 = vld [vmem:[#allocation6 + $0x3d8] sm:$0xff]   ;;  %v451_v5 = vld [vmem:[%s5314_s29 + $0x1a0] sm:$0xff] }
  0xee   : > { %4279 = vmatpush3.bf16.msra.mxu0 %v4780_v20  ;;  %v506_v20 = vld [vmem:[%s5314_s29 + $0x358] sm:$0xff] }
  0xef   : > { %4343 = vmatpush3.bf16.msra.mxu1 %v4782_v22  ;;  %4280 = vmatprep.subr.bf16.mxu0 %v4783_v27  ;;  %v3826_v22 = vcombine.low %v482_v7, %v490_v8  ;;  %v3843_v24 = vcombine.high %v498_v19, %v506_v20  ;;  %v514_v27 = vld [vmem:[%s5314_s29 + $0x398] sm:$0xff]  ;;  %v452_v8 = vld [vmem:[%s5314_s29 + $0x1a8] sm:$0xff] }
  0xf0   : > { %4344 = vmatprep.subr.bf16.mxu1 %v4785_v28  ;;  %v522_v28 = vld [vmem:[%s5314_s29 + $0x3d8] sm:$0xff] }
  0xf1   : > { %2433 = vmatmul.mubr.bf16.gmra.mrb[36].mxu0 %v3760_v29  ;;  %v3840_v29 = vcombine.low %v497_v17, %v505_v18  ;;  %v4820_v7 = vld [vmem:[#allocation6 + $0x318] sm:$0xff]   ;;  %v4826_v17 = vld [vmem:[#allocation6 + $0x3a0] sm:$0xff]   ;;  %v4827_v18 = vld [vmem:[#allocation6 + $0x368] sm:$0xff]  }
  0xf2   : > { %2530 = vmatmul.mubr.bf16.gmra.mrb[36].mxu1 %v3762_v30  ;;  %2440 = vmatprep.mubr.bf16.mxu0 %v3777_v31  ;;  %v3842_v30 = vcombine.low %v498_v19, %v506_v20  ;;  %v3857_v31 = vcombine.high %v513_v25, %v521_v26  ;;  %v4829_v20 = vld [vmem:[#allocation6 + $0x3e8] sm:$0xff]  }
  0xf3   : > { %2537 = vmatprep.mubr.bf16.mxu1 %v3779_v32  ;;  %4281 = vmatpush3.bf16.msra.mxu0 %v4784_v33  ;;  %v3859_v32 = vcombine.high %v514_v27, %v522_v28  ;;  %v403_v33 = vld [vmem:[%s5314_s29 + $0x20] sm:$0xff]  ;;  %v476_v25 = vld [vmem:[%s5314_s29 + $0x268] sm:$0xff] }
  0xf4   : > { %4345 = vmatpush3.bf16.msra.mxu1 %v4786_v34  ;;  %4282 = vmatprep.subr.bf16.mxu0 %v4787_v35  ;;  %v411_v34 = vld [vmem:[%s5314_s29 + $0x60] sm:$0xff]  ;;  %v404_v35 = vld [vmem:[%s5314_s29 + $0x28] sm:$0xff] }
  0xf5   : > { %4346 = vmatprep.subr.bf16.mxu1 %v4789_v38  ;;  %v3858_v38 = vcombine.low %v514_v27, %v522_v28  ;;  %v3749_v39 = vcombine.high %v403_v33, %v411_v34  ;;  %v3751_v40 = vcombine.high %v404_v35, %v412_v36  ;;  %v4830_v26 = vld [vmem:[#allocation6 + $0x3a8] sm:$0xff]   ;;  %v4831_v27 = vld [vmem:[#allocation6 + $0x370] sm:$0xff]  }
  0xf7   : > { %4283 = vmatpush3.bf16.msra.mxu0 %v4788_v41  ;;  %v419_v41 = vld [vmem:[%s5314_s29 + $0xa0] sm:$0xff] }
  0xf8   : > { %4347 = vmatpush3.bf16.msra.mxu1 %v4790_v42  ;;  %4284 = vmatprep.subr.bf16.mxu0 %v4791_v43  ;;  %v427_v42 = vld [vmem:[%s5314_s29 + $0xe0] sm:$0xff]  ;;  %v3748_v43 = vcombine.low %v403_v33, %v411_v34  ;;  %v4832_v33 = vld [vmem:[#allocation6 + $0x330] sm:$0xff]  }
  0xf9   : > { %2441 = vmatmul.mubr.bf16.gmra.mrb[40].mxu0 %v3776_v44  ;;  %4348 = vmatprep.subr.bf16.mxu1 %v4793_v45  ;;  %v420_v44 = vld [vmem:[%s5314_s29 + $0xa8] sm:$0xff]  ;;  %v4834_v34 = vld [vmem:[#allocation6 + $0x3b0] sm:$0xff]  }
  0xfa   : > { %2538 = vmatmul.mubr.bf16.gmra.mrb[40].mxu1 %v3778_v46  ;;  %2448 = vmatprep.mubr.bf16.mxu0 %v3793_v47  ;;  %v428_v45 = vld [vmem:[%s5314_s29 + $0xe8] sm:$0xff]  ;;  %v3750_v46 = vcombine.low %v404_v35, %v412_v36  ;;  %v4808_v47 = vld [vmem:[#allocation6 + $0x300] sm:$0xff]   ;;  %v4835_v35 = vld [vmem:[#allocation6 + $0x378] sm:$0xff]  }
  0xfb   : > { %2545 = vmatprep.mubr.bf16.mxu1 %v3795_v49  ;;  %4285 = vmatpush3.bf16.msra.mxu0 %v4792_v48  ;;  %v4810_v48 = vld [vmem:[#allocation6 + $0x380] sm:$0xff]   ;;  %v3765_v49 = vcombine.high %v419_v41, %v427_v42  ;;  %v4837_v36 = vld [vmem:[#allocation6 + $0x3f8] sm:$0xff]  }
  0xfc   : > { %4349 = vmatpush3.bf16.msra.mxu1 %v4794_v50  ;;  %4286 = vmatprep.subr.bf16.mxu0 %v4795_v51  ;;  %v3767_v50 = vcombine.high %v420_v44, %v428_v45  ;;  %v4811_v51 = vld [vmem:[#allocation6 + $0x348] sm:$0xff]  }
  0xfd   : > { %4350 = vmatprep.subr.bf16.mxu1 %v4797_v53  ;;  %v4812_v53 = vld [vmem:[#allocation6 + $0x308] sm:$0xff]  }
  0xff   : > { %4287 = vmatpush3.bf16.msra.mxu0 %v4796_v57  ;;  %v4815_v57 = vld [vmem:[#allocation6 + $0x350] sm:$0xff]  }
 0x100   : > { %4351 = vmatpush3.bf16.msra.mxu1 %v4798_v58  ;;  %4288 = vmatprep.subr.bf16.mxu0 %v4799_v59  ;;  %v436_v58 = vld [vmem:[%s5314_s29 + $0x128] sm:$0xff] }
 0x101   : > { %2449 = vmatmul.mubr.bf16.gmra.mrb[44].mxu0 %v3792_v60  ;;  %4352 = vmatprep.subr.bf16.mxu1 %v4801_v61  ;;  %v444_v59 = vld [vmem:[%s5314_s29 + $0x168] sm:$0xff]  ;;  %v4817_v60 = vld [vmem:[#allocation6 + $0x3d0] sm:$0xff]   ;;  %v3764_v61 = vcombine.low %v419_v41, %v427_v42  ;;  %v4838_v42 = vld [vmem:[#allocation6 + $0x3b8] sm:$0xff]  }
 0x102   : > { %2546 = vmatmul.mubr.bf16.gmra.mrb[44].mxu1 %v3794_v62  ;;  %2456 = vmatprep.mubr.bf16.mxu0 %v3809_v63  ;;  %v3766_v62 = vcombine.low %v420_v44, %v428_v45  ;;  %v3781_v63 = vcombine.high %v435_v55, %v443_v56  ;;  %v492_v41 = vld [vmem:[%s5314_s29 + $0x2e8] sm:$0xff] }
 0x103   : > { %2553 = vmatprep.mubr.bf16.mxu1 %v3811_v0  ;;  %4289 = vmatpush3.bf16.msra.mxu0 %v4800_v1  ;;  %v4816_v0 = vld [vmem:[#allocation6 + $0x310] sm:$0xff]   ;;  %v3783_v1 = vcombine.high %v436_v58, %v444_v59 }
 0x104   : > { %4353 = vmatpush3.bf16.msra.mxu1 %v4802_v2  ;;  %4290 = vmatprep.subr.bf16.mxu0 %v4803_v3  ;;  %v4818_v2 = vld [vmem:[#allocation6 + $0x390] sm:$0xff]   ;;  %v4819_v3 = vld [vmem:[#allocation6 + $0x358] sm:$0xff]  }
 0x105   : > { %4354 = vmatprep.subr.bf16.mxu1 %v4805_v6  ;;  %v459_v6 = vld [vmem:[%s5314_s29 + $0x1e0] sm:$0xff] }
 0x106   : > { %v3796_v28 = vcombine.low %v451_v5, %v459_v6 }
 0x107   : > { %4291 = vmatpush3.bf16.msra.mxu0 %v4804_v9  ;;  %v460_v9 = vld [vmem:[%s5314_s29 + $0x1e8] sm:$0xff] }
 0x108   : > { %4355 = vmatpush3.bf16.msra.mxu1 %v4806_v10  ;;  %4404 = vmatprep.subr.bf16.mxu0 %v4807_v11  ;;  %v4822_v10 = vld [vmem:[#allocation6 + $0x398] sm:$0xff]   ;;  %v4823_v11 = vld [vmem:[#allocation6 + $0x360] sm:$0xff]   ;;  %v3799_v19 = vcombine.high %v452_v8, %v460_v9 }
 0x109   : > { %2457 = vmatmul.mubr.bf16.gmra.mrb[48].mxu0 %v3808_v12  ;;  %4468 = vmatprep.subr.bf16.mxu1 %v4809_v13  ;;  %v4825_v12 = vld [vmem:[#allocation6 + $0x3e0] sm:$0xff]   ;;  %v3780_v13 = vcombine.low %v435_v55, %v443_v56 }
 0x10a   : > { %2554 = vmatmul.mubr.bf16.gmra.mrb[48].mxu1 %v3810_v14  ;;  %2464 = vmatprep.mubr.bf16.mxu0 %v3825_v15  ;;  %v4824_v14 = vld [vmem:[#allocation6 + $0x320] sm:$0xff]   ;;  %v3782_v15 = vcombine.low %v436_v58, %v444_v59  ;;  %v524_v58 = vld [vmem:[%s5314_s29 + $0x3e8] sm:$0xff] }
 0x10b   : > { %2561 = vmatprep.mubr.bf16.mxu1 %v3827_v16  ;;  %v3797_v16 = vcombine.high %v451_v5, %v459_v6  ;;  %v515_v55 = vld [vmem:[%s5314_s29 + $0x3a0] sm:$0xff] }
 0x10c   : > { %v523_v56 = vld [vmem:[%s5314_s29 + $0x3e0] sm:$0xff] }
 0x111   : > { %2465 = vmatmul.mubr.bf16.gmra.mrb[52].mxu0 %v3824_v21  ;;  %v467_v21 = vld [vmem:[%s5314_s29 + $0x220] sm:$0xff] }
 0x112   : > { %2562 = vmatmul.mubr.bf16.gmra.mrb[52].mxu1 %v3826_v22  ;;  %2472 = vmatprep.mubr.bf16.mxu0 %v3841_v23  ;;  %v475_v22 = vld [vmem:[%s5314_s29 + $0x260] sm:$0xff]  ;;  %v468_v23 = vld [vmem:[%s5314_s29 + $0x228] sm:$0xff] }
 0x113   : > { %2569 = vmatprep.mubr.bf16.mxu1 %v3843_v24  ;;  %v4828_v24 = vld [vmem:[#allocation6 + $0x328] sm:$0xff]   ;;  %v3814_v44 = vcombine.low %v468_v23, %v476_v25 }
 0x119   : > { %2473 = vmatmul.mubr.bf16.gmra.mrb[56].mxu0 %v3840_v29  ;;  %v4833_v29 = vld [vmem:[#allocation6 + $0x3f0] sm:$0xff]  }
 0x11a   : > { %2570 = vmatmul.mubr.bf16.gmra.mrb[56].mxu1 %v3842_v30  ;;  %2480 = vmatprep.mubr.bf16.mxu0 %v3857_v31  ;;  %v3798_v30 = vcombine.low %v452_v8, %v460_v9  ;;  %v3813_v31 = vcombine.high %v467_v21, %v475_v22  ;;  %v429_v8 = vld [vmem:[%s5314_s29 + $0xf0] sm:$0xff]  ;;  %v422_v9 = vld [vmem:[%s5314_s29 + $0xb8] sm:$0xff] }
 0x11b   : > { %2577 = vmatprep.mubr.bf16.mxu1 %v3859_v32  ;;  %v3815_v32 = vcombine.high %v468_v23, %v476_v25  ;;  %v453_v23 = vld [vmem:[%s5314_s29 + $0x1b0] sm:$0xff]  ;;  %v454_v25 = vld [vmem:[%s5314_s29 + $0x1b8] sm:$0xff] }
 0x121   : > { %2481 = vmatmul.mubr.bf16.gmra.mrb[60].mxu0 %v3856_v37  ;;  %v483_v37 = vld [vmem:[%s5314_s29 + $0x2a0] sm:$0xff] }
 0x122   : > { %2578 = vmatmul.mubr.bf16.gmra.mrb[60].mxu1 %v3858_v38  ;;  %2618 = vmatprep.mubr.bf16.mxu0 %v3749_v39  ;;  %v491_v38 = vld [vmem:[%s5314_s29 + $0x2e0] sm:$0xff]  ;;  %v4836_v39 = vld [vmem:[#allocation6 + $0x338] sm:$0xff]  }
 0x123   : > { %2715 = vmatprep.mubr.bf16.mxu1 %v3751_v40  ;;  %v484_v40 = vld [vmem:[%s5314_s29 + $0x2a8] sm:$0xff]  ;;  %v3829_v45 = vcombine.high %v483_v37, %v491_v38 }
 0x129   : > { %2619 = vmatmul.mubr.bf16.vlgmr.msra.gmra.mrb[64].mxu0 %v3748_v43  ;;  %v3812_v43 = vcombine.low %v467_v21, %v475_v22 }
 0x12a   : > { %2716 = vmatmul.mubr.bf16.vlgmr.msra.gmra.mrb[64].mxu1 %v3750_v46  ;;  %4405 = vmatpush3.bf16.msra.mxu0 %v4808_v47  ;;  %v3831_v46 = vcombine.high %v484_v40, %v492_v41  ;;  %v499_v47 = vld [vmem:[%s5314_s29 + $0x320] sm:$0xff] }
 0x12b   : > { %4469 = vmatpush3.bf16.msra.mxu1 %v4810_v48  ;;  %2626 = vmatprep.mubr.bf16.mxu0 %v3765_v49  ;;  %v507_v48 = vld [vmem:[%s5314_s29 + $0x360] sm:$0xff]  ;;  %v500_v49 = vld [vmem:[%s5314_s29 + $0x328] sm:$0xff] }
 0x12c   : > { %2723 = vmatprep.mubr.bf16.mxu1 %v3767_v50  ;;  %4406 = vmatprep.subr.bf16.mxu0 %v4811_v51  ;;  %v508_v50 = vld [vmem:[%s5314_s29 + $0x368] sm:$0xff]  ;;  %v3828_v51 = vcombine.low %v483_v37, %v491_v38  ;;  %v3844_v59 = vcombine.low %v499_v47, %v507_v48  ;;  %v5447_v37 = vld [vmem:[%s5783_s2] ss:$0 sm:$0xff] }
 0x12d   : > { %4470 = vmatprep.subr.bf16.mxu1 %v4813_v52  ;;  %v3830_v52 = vcombine.low %v484_v40, %v492_v41 }
 0x12e   : > { %4407 = vmatpush3.bf16.msra.mxu0 %v4812_v53  ;;  %v3845_v53 = vcombine.high %v499_v47, %v507_v48 }
 0x12f   : > { %4471 = vmatpush3.bf16.msra.mxu1 %v4814_v54  ;;  %4408 = vmatprep.subr.bf16.mxu0 %v4815_v57  ;;  %v3847_v54 = vcombine.high %v500_v49, %v508_v50  ;;  %v516_v57 = vld [vmem:[%s5314_s29 + $0x3a8] sm:$0xff] }
 0x130   : > { %4472 = vmatprep.subr.bf16.mxu1 %v4817_v60  ;;  %v3846_v60 = vcombine.low %v500_v49, %v508_v50 }
 0x131   : > { %2627 = vmatmul.mubr.bf16.gmra.mrb[68].mxu0 %v3764_v61  ;;  %v3861_v61 = vcombine.high %v515_v55, %v523_v56 }
 0x132   : > { %2724 = vmatmul.mubr.bf16.gmra.mrb[68].mxu1 %v3766_v62  ;;  %2634 = vmatprep.mubr.bf16.mxu0 %v3781_v63  ;;  %v3863_v62 = vcombine.high %v516_v57, %v524_v58  ;;  %v405_v63 = vld [vmem:[%s5314_s29 + $0x30] sm:$0xff] }
 0x133   : > { %2731 = vmatprep.mubr.bf16.mxu1 %v3783_v1  ;;  %4409 = vmatpush3.bf16.msra.mxu0 %v4816_v0  ;;  %v413_v0 = vld [vmem:[%s5314_s29 + $0x70] sm:$0xff]  ;;  %v406_v1 = vld [vmem:[%s5314_s29 + $0x38] sm:$0xff] }
 0x134   : > { %4473 = vmatpush3.bf16.msra.mxu1 %v4818_v2  ;;  %4410 = vmatprep.subr.bf16.mxu0 %v4819_v3  ;;  %v414_v2 = vld [vmem:[%s5314_s29 + $0x78] sm:$0xff]  ;;  %v3860_v3 = vcombine.low %v515_v55, %v523_v56  ;;  %v3753_v5 = vcombine.high %v405_v63, %v413_v0  ;;  %v485_v55 = vld [vmem:[%s5314_s29 + $0x2b0] sm:$0xff] }
 0x135   : > { %4474 = vmatprep.subr.bf16.mxu1 %v4821_v4  ;;  %v3862_v4 = vcombine.low %v516_v57, %v524_v58  ;;  %v3755_v6 = vcombine.high %v406_v1, %v414_v2  ;;  %v493_v56 = vld [vmem:[%s5314_s29 + $0x2f0] sm:$0xff] }
 0x137   : > { %4411 = vmatpush3.bf16.msra.mxu0 %v4820_v7  ;;  %v421_v7 = vld [vmem:[%s5314_s29 + $0xb0] sm:$0xff] }
 0x138   : > { %4475 = vmatpush3.bf16.msra.mxu1 %v4822_v10  ;;  %4412 = vmatprep.subr.bf16.mxu0 %v4823_v11  ;;  %v430_v10 = vld [vmem:[%s5314_s29 + $0xf8] sm:$0xff]  ;;  %v3752_v11 = vcombine.low %v405_v63, %v413_v0 }
 0x139   : > { %2635 = vmatmul.mubr.bf16.gmra.mrb[72].mxu0 %v3780_v13  ;;  %4476 = vmatprep.subr.bf16.mxu1 %v4825_v12  ;;  %v3754_v12 = vcombine.low %v406_v1, %v414_v2  ;;  %v3769_v13 = vcombine.high %v421_v7, %v429_v8 }
 0x13a   : > { %2732 = vmatmul.mubr.bf16.gmra.mrb[72].mxu1 %v3782_v15  ;;  %2642 = vmatprep.mubr.bf16.mxu0 %v3797_v16  ;;  %v437_v15 = vld [vmem:[%s5314_s29 + $0x130] sm:$0xff] }
 0x13b   : > { %2739 = vmatprep.mubr.bf16.mxu1 %v3799_v19  ;;  %4413 = vmatpush3.bf16.msra.mxu0 %v4824_v14  ;;  %v3771_v14 = vcombine.high %v422_v9, %v430_v10  ;;  %v445_v16 = vld [vmem:[%s5314_s29 + $0x170] sm:$0xff]  ;;  %v3768_v19 = vcombine.low %v421_v7, %v429_v8 }
 0x13c   : > { %4477 = vmatpush3.bf16.msra.mxu1 %v4826_v17  ;;  %4414 = vmatprep.subr.bf16.mxu0 %v4827_v18  ;;  %v438_v17 = vld [vmem:[%s5314_s29 + $0x138] sm:$0xff]  ;;  %v3785_v21 = vcombine.high %v437_v15, %v445_v16 }
 0x13d   : > { %4478 = vmatprep.subr.bf16.mxu1 %v4829_v20  ;;  %v446_v18 = vld [vmem:[%s5314_s29 + $0x178] sm:$0xff]  ;;  %v3770_v20 = vcombine.low %v422_v9, %v430_v10 }
 0x13e   : > { %v3787_v22 = vcombine.high %v438_v17, %v446_v18 }
 0x13f   : > { %4415 = vmatpush3.bf16.msra.mxu0 %v4828_v24  ;;  %v461_v24 = vld [vmem:[%s5314_s29 + $0x1f0] sm:$0xff] }
 0x140   : > { %4479 = vmatpush3.bf16.msra.mxu1 %v4830_v26  ;;  %4416 = vmatprep.subr.bf16.mxu0 %v4831_v27  ;;  %v462_v26 = vld [vmem:[%s5314_s29 + $0x1f8] sm:$0xff]  ;;  %v3784_v27 = vcombine.low %v437_v15, %v445_v16  ;;  %v501_v15 = vld [vmem:[%s5314_s29 + $0x330] sm:$0xff] }
 0x141   : > { %2643 = vmatmul.mubr.bf16.gmra.mrb[76].mxu0 %v3796_v28  ;;  %4480 = vmatprep.subr.bf16.mxu1 %v4833_v29  ;;  %v3786_v28 = vcombine.low %v438_v17, %v446_v18  ;;  %v3801_v29 = vcombine.high %v453_v23, %v461_v24  ;;  %v509_v16 = vld [vmem:[%s5314_s29 + $0x370] sm:$0xff] }
 0x142   : > { %2740 = vmatmul.mubr.bf16.gmra.mrb[76].mxu1 %v3798_v30  ;;  %2650 = vmatprep.mubr.bf16.mxu0 %v3813_v31  ;;  %v3803_v30 = vcombine.high %v454_v25, %v462_v26  ;;  %v469_v31 = vld [vmem:[%s5314_s29 + $0x230] sm:$0xff] }
 0x143   : > { %2747 = vmatprep.mubr.bf16.mxu1 %v3815_v32  ;;  %4417 = vmatpush3.bf16.msra.mxu0 %v4832_v33  ;;  %v477_v32 = vld [vmem:[%s5314_s29 + $0x270] sm:$0xff] }
 0x144   : > { %4481 = vmatpush3.bf16.msra.mxu1 %v4834_v34  ;;  %4418 = vmatprep.subr.bf16.mxu0 %v4835_v35  ;;  %v470_v34 = vld [vmem:[%s5314_s29 + $0x238] sm:$0xff]  ;;  %v3816_v63 = vcombine.low %v469_v31, %v477_v32 }
 0x145   : > { %4482 = vmatprep.subr.bf16.mxu1 %v4837_v36  ;;  %v478_v35 = vld [vmem:[%s5314_s29 + $0x278] sm:$0xff] }
 0x146   : > { %v3819_v48 = vcombine.high %v470_v34, %v478_v35 }
 0x147   : > { %4419 = vmatpush3.bf16.msra.mxu0 %v4836_v39  ;;  %v3800_v39 = vcombine.low %v453_v23, %v461_v24  ;;  %v3832_v23 = vcombine.low %v485_v55, %v493_v56 }
 0x148   : > { %4483 = vmatpush3.bf16.msra.mxu1 %v4838_v42 }
 0x149   : > { %2651 = vmatmul.mubr.bf16.gmra.mrb[80].mxu0 %v3812_v43  ;;  %v3802_v43 = vcombine.low %v454_v25, %v462_v26 }
 0x14a   : > { %2748 = vmatmul.mubr.bf16.gmra.mrb[80].mxu1 %v3814_v44  ;;  %2658 = vmatprep.mubr.bf16.mxu0 %v3829_v45  ;;  %v3817_v44 = vcombine.high %v469_v31, %v477_v32 }
 0x14b   : > { %2755 = vmatprep.mubr.bf16.mxu1 %v3831_v46 }
 0x151   : > { %2659 = vmatmul.mubr.bf16.gmra.mrb[84].mxu0 %v3828_v51 }
 0x152   : > { %2756 = vmatmul.mubr.bf16.gmra.mrb[84].mxu1 %v3830_v52  ;;  %2666 = vmatprep.mubr.bf16.mxu0 %v3845_v53 }
 0x153   : > { %2763 = vmatprep.mubr.bf16.mxu1 %v3847_v54 }
 0x159   : > { %2667 = vmatmul.mubr.bf16.gmra.mrb[88].mxu0 %v3844_v59  ;;  %v486_v59 = vld [vmem:[%s5314_s29 + $0x2b8] sm:$0xff] }
 0x15a   : > { %2764 = vmatmul.mubr.bf16.gmra.mrb[88].mxu1 %v3846_v60  ;;  %2674 = vmatprep.mubr.bf16.mxu0 %v3861_v61  ;;  %v494_v60 = vld [vmem:[%s5314_s29 + $0x2f8] sm:$0xff] }
 0x15b   : > { %2771 = vmatprep.mubr.bf16.mxu1 %v3863_v62  ;;  %v3835_v8 = vcombine.high %v486_v59, %v494_v60 }
 0x161   : > { %2675 = vmatmul.mubr.bf16.gmra.mrb[92].mxu0 %v3860_v3  ;;  %v3818_v3 = vcombine.low %v470_v34, %v478_v35 }
 0x162   : > { %2772 = vmatmul.mubr.bf16.gmra.mrb[92].mxu1 %v3862_v4  ;;  %2812 = vmatprep.mubr.bf16.mxu0 %v3753_v5  ;;  %v3833_v4 = vcombine.high %v485_v55, %v493_v56 }
 0x163   : > { %2909 = vmatprep.mubr.bf16.mxu1 %v3755_v6 }
 0x169   : > { %2813 = vmatmul.mubr.bf16.vlgmr.msra.gmra.mrb[96].mxu0 %v3752_v11 }
 0x16a   : > { %2910 = vmatmul.mubr.bf16.vlgmr.msra.gmra.mrb[96].mxu1 %v3754_v12  ;;  %2820 = vmatprep.mubr.bf16.mxu0 %v3769_v13 }
 0x16b   : > { %2917 = vmatprep.mubr.bf16.mxu1 %v3771_v14 }
 0x171   : > { %2821 = vmatmul.mubr.bf16.gmra.mrb[100].mxu0 %v3768_v19  ;;  %v502_v19 = vld [vmem:[%s5314_s29 + $0x338] sm:$0xff] }
 0x172   : > { %2918 = vmatmul.mubr.bf16.gmra.mrb[100].mxu1 %v3770_v20  ;;  %2828 = vmatprep.mubr.bf16.mxu0 %v3785_v21  ;;  %v510_v20 = vld [vmem:[%s5314_s29 + $0x378] sm:$0xff] }
 0x173   : > { %2925 = vmatprep.mubr.bf16.mxu1 %v3787_v22  ;;  %v3851_v32 = vcombine.high %v502_v19, %v510_v20 }
 0x179   : > { %2829 = vmatmul.mubr.bf16.gmra.mrb[104].mxu0 %v3784_v27  ;;  %v3834_v27 = vcombine.low %v486_v59, %v494_v60 }
 0x17a   : > { %2926 = vmatmul.mubr.bf16.gmra.mrb[104].mxu1 %v3786_v28  ;;  %2836 = vmatprep.mubr.bf16.mxu0 %v3801_v29  ;;  %v3849_v28 = vcombine.high %v501_v15, %v509_v16 }
 0x17b   : > { %2933 = vmatprep.mubr.bf16.mxu1 %v3803_v30 }
 0x17c   : > { %v4036_v33 = vpop.f32.mrb[0].mxu0 }
 0x17d   : > { %v4100_v36 = vpop.f32.mrb[0].mxu1  ;;  %v4037_v38 = vpop.f32.mrb[1].mxu0 }
 0x17e   : > { %v4038_v40 = vadd.f32 %v4037_v38, %v4036_v33  ;;  %v4101_v41 = vpop.f32.mrb[1].mxu1  ;;  %v4039_v42 = vpop.f32.mrb[2].mxu0 }
 0x17f   : > { %v4102_v45 = vadd.f32 %v4101_v41, %v4100_v36  ;;  %v4103_v46 = vpop.f32.mrb[2].mxu1  ;;  %v4040_v47 = vpop.f32.mrb[3].mxu0  ;;  %v525_v41 = vld [vmem:[%s5314_s29 + $0x3f0] sm:$0xff] }
 0x180   : > { %v2233_v49 = vadd.f32 %v4038_v40, %v5447_v37  ;;  %v4041_v50 = vadd.f32 %v4040_v47, %v4039_v42  ;;  %v4104_v51 = vpop.f32.mrb[3].mxu1  ;;  %v517_v40 = vld [vmem:[%s5314_s29 + $0x3b0] sm:$0xff] }
 0x181   : > { %v4105_v52 = vadd.f32 %v4104_v51, %v4103_v46  ;;  %2837 = vmatmul.mubr.bf16.gmra.mrb[108].mxu0 %v3800_v39 }
 0x182   : > { %v5450_v53 = vadd.f32 %v4102_v45, %v2233_v49  ;;  %v2236_v54 = vadd.f32 %v4041_v50, %v5447_v37  ;;  %2934 = vmatmul.mubr.bf16.gmra.mrb[108].mxu1 %v3802_v43  ;;  %2844 = vmatprep.mubr.bf16.mxu0 %v3817_v44  ;;  %v518_v44 = vld [vmem:[%s5314_s29 + $0x3b8] sm:$0xff] }
 0x183   : > { %2941 = vmatprep.mubr.bf16.mxu1 %v3819_v48  ;;  %v526_v45 = vld [vmem:[%s5314_s29 + $0x3f8] sm:$0xff]  ;;  %v3848_v48 = vcombine.low %v501_v15, %v509_v16  ;;  %s5737_s29 = scalar_lea.hbm %s5790_s9, %s4015_s17 }
 0x184   : > { %v5455_v57 = vadd.f32 %v4105_v52, %v2236_v54  ;;  %v4042_v58 = vpop.f32.mrb[4].mxu0  ;;  %v3850_v52 = vcombine.low %v502_v19, %v510_v20  ;;  %v3865_v54 = vcombine.high %v517_v40, %v525_v41  ;;  %v3867_v59 = vcombine.high %v518_v44, %v526_v45 }
 0x185   : > { %v4106_v61 = vpop.f32.mrb[4].mxu1  ;;  %v4043_v62 = vpop.f32.mrb[5].mxu0 }
 0x186   : > { %v4044_v0 = vadd.f32 %v4043_v62, %v4042_v58  ;;  %v4107_v1 = vpop.f32.mrb[5].mxu1  ;;  %v4045_v2 = vpop.f32.mrb[6].mxu0 }
 0x187   : > { %v4108_v5 = vadd.f32 %v4107_v1, %v4106_v61  ;;  %v4109_v6 = vpop.f32.mrb[6].mxu1  ;;  %v4046_v7 = vpop.f32.mrb[7].mxu0 }
 0x188   : > { %v2241_v9 = vadd.f32 %v4044_v0, %v5447_v37  ;;  %v4047_v10 = vadd.f32 %v4046_v7, %v4045_v2  ;;  %v4110_v11 = vpop.f32.mrb[7].mxu1  ;;  %v3864_v7 = vcombine.low %v517_v40, %v525_v41 }
 0x189   : > { %v4111_v12 = vadd.f32 %v4110_v11, %v4109_v6  ;;  %2845 = vmatmul.mubr.bf16.gmra.mrb[112].mxu0 %v3816_v63  ;;  %v3866_v11 = vcombine.low %v518_v44, %v526_v45  ;;  %v4841_v45 = vld [vmem:[#allocation8 + $0x10] sm:$0xff]  }
 0x18a   : > { %v5460_v13 = vadd.f32 %v4108_v5, %v2241_v9  ;;  %v2244_v14 = vadd.f32 %v4047_v10, %v5447_v37  ;;  %2942 = vmatmul.mubr.bf16.gmra.mrb[112].mxu1 %v3818_v3  ;;  %2852 = vmatprep.mubr.bf16.mxu0 %v3833_v4  ;;  %v4839_v4 = vld [vmem:[#allocation8] sm:$0xff]  }
 0x18b   : > { %2949 = vmatprep.mubr.bf16.mxu1 %v3835_v8  ;;  %4564 = vmatprep.subr.bf16.mxu0 %v4839_v4 }
 0x18c   : > { %v5465_v17 = vadd.f32 %v4111_v12, %v2244_v14  ;;  %v4048_v18 = vpop.f32.mrb[8].mxu0  ;;  %4565 = vmatpush3.bf16.msra.mxu0 %v4839_v4 }
 0x18d   : > { %v4112_v21 = vpop.f32.mrb[8].mxu1  ;;  %v4049_v22 = vpop.f32.mrb[9].mxu0 }
 0x18e   : > { %v4050_v24 = vadd.f32 %v4049_v22, %v4048_v18  ;;  %v4113_v25 = vpop.f32.mrb[9].mxu1  ;;  %v4051_v26 = vpop.f32.mrb[10].mxu0 }
 0x18f   : > { %v4114_v29 = vadd.f32 %v4113_v25, %v4112_v21  ;;  %v4115_v30 = vpop.f32.mrb[10].mxu1  ;;  %v4052_v31 = vpop.f32.mrb[11].mxu0  ;;  %v4840_v25 = vld [vmem:[#allocation8 + $0x8] sm:$0xff]  }
 0x190   : > { %v2249_v33 = vadd.f32 %v4050_v24, %v5447_v37  ;;  %v4053_v34 = vadd.f32 %v4052_v31, %v4051_v26  ;;  %v4116_v35 = vpop.f32.mrb[11].mxu1  ;;  %4566 = vmatprep.subr.bf16.mxu0 %v4840_v25 }
 0x191   : > { %v4117_v36 = vadd.f32 %v4116_v35, %v4115_v30  ;;  %2853 = vmatmul.mubr.bf16.gmra.mrb[116].mxu0 %v3832_v23 }
 0x192   : > { %v5470_v38 = vadd.f32 %v4114_v29, %v2249_v33  ;;  %v2252_v39 = vadd.f32 %v4053_v34, %v5447_v37  ;;  %2950 = vmatmul.mubr.bf16.gmra.mrb[116].mxu1 %v3834_v27  ;;  %2860 = vmatprep.mubr.bf16.mxu0 %v3849_v28 }
 0x193   : > { %2957 = vmatprep.mubr.bf16.mxu1 %v3851_v32  ;;  %4567 = vmatpush3.bf16.msra.mxu0 %v4840_v25 }
 0x194   : > { %v5475_v42 = vadd.f32 %v4117_v36, %v2252_v39  ;;  %v4054_v43 = vpop.f32.mrb[12].mxu0  ;;  %4568 = vmatprep.subr.bf16.mxu0 %v4841_v45 }
 0x195   : > { %v4118_v46 = vpop.f32.mrb[12].mxu1  ;;  %v4055_v47 = vpop.f32.mrb[13].mxu0 }
 0x196   : > { %v4056_v49 = vadd.f32 %v4055_v47, %v4054_v43  ;;  %v4119_v50 = vpop.f32.mrb[13].mxu1  ;;  %v4057_v51 = vpop.f32.mrb[14].mxu0 }
 0x197   : > { %v4120_v55 = vadd.f32 %v4119_v50, %v4118_v46  ;;  %v4121_v56 = vpop.f32.mrb[14].mxu1  ;;  %v4058_v58 = vpop.f32.mrb[15].mxu0  ;;  %4569 = vmatpush3.bf16.msra.mxu0 %v4841_v45 }
 0x198   : > { %v2257_v60 = vadd.f32 %v4056_v49, %v5447_v37  ;;  %v4059_v61 = vadd.f32 %v4058_v58, %v4057_v51  ;;  %v4122_v62 = vpop.f32.mrb[15].mxu1 }
 0x199   : > { %v4123_v63 = vadd.f32 %v4122_v62, %v4121_v56  ;;  %2861 = vmatmul.mubr.bf16.gmra.mrb[120].mxu0 %v3848_v48 }
 0x19a   : > { %v5480_v0 = vadd.f32 %v4120_v55, %v2257_v60  ;;  %v2260_v1 = vadd.f32 %v4059_v61, %v5447_v37  ;;  %2958 = vmatmul.mubr.bf16.gmra.mrb[120].mxu1 %v3850_v52  ;;  %2868 = vmatprep.mubr.bf16.mxu0 %v3865_v54 }
 0x19b   : > { %2965 = vmatprep.mubr.bf16.mxu1 %v3867_v59 }
 0x19c   : > { %v5483_v2 = vadd.f32 %v4123_v63, %v2260_v1  ;;  %v4060_v3 = vpop.f32.mrb[16].mxu0  ;;  %v4842_v1 = vld [vmem:[#allocation8 + $0x18] sm:$0xff]  }
 0x19d   : > { %v4124_v5 = vpop.f32.mrb[16].mxu1  ;;  %v4061_v6 = vpop.f32.mrb[17].mxu0  ;;  %4570 = vmatprep.subr.bf16.mxu0 %v4842_v1 }
 0x19e   : > { %v4062_v8 = vadd.f32 %v4061_v6, %v4060_v3  ;;  %v4125_v9 = vpop.f32.mrb[17].mxu1  ;;  %v4063_v10 = vpop.f32.mrb[18].mxu0  ;;  %4571 = vmatpush3.bf16.msra.mxu0 %v4842_v1 }
 0x19f   : > { %v4126_v12 = vadd.f32 %v4125_v9, %v4124_v5  ;;  %v4127_v14 = vpop.f32.mrb[18].mxu1  ;;  %v4064_v15 = vpop.f32.mrb[19].mxu0 }
 0x1a0   : > { %v2265_v16 = vadd.f32 %v4062_v8, %v5447_v37  ;;  %v4065_v18 = vadd.f32 %v4064_v15, %v4063_v10  ;;  %v4128_v19 = vpop.f32.mrb[19].mxu1 }
 0x1a1   : > { %v4129_v20 = vadd.f32 %v4128_v19, %v4127_v14  ;;  %2869 = vmatmul.mubr.bf16.gmra.mrb[124].mxu0 %v3864_v7 }
 0x1a2   : > { %v5486_v21 = vadd.f32 %v4126_v12, %v2265_v16  ;;  %v2268_v22 = vadd.f32 %v4065_v18, %v5447_v37  ;;  %2966 = vmatmul.mubr.bf16.gmra.mrb[124].mxu1 %v3866_v11 }
 0x1a4   : > { %v5489_v23 = vadd.f32 %v4129_v20, %v2268_v22  ;;  %v4066_v24 = vpop.f32.mrb[20].mxu0  ;;  %v4843_v22 = vld [vmem:[#allocation8 + $0x20] sm:$0xff]  }
 0x1a5   : > { %v4130_v26 = vpop.f32.mrb[20].mxu1  ;;  %v4067_v27 = vpop.f32.mrb[21].mxu0  ;;  %4572 = vmatprep.subr.bf16.mxu0 %v4843_v22 }
 0x1a6   : > { %v4068_v28 = vadd.f32 %v4067_v27, %v4066_v24  ;;  %v4131_v29 = vpop.f32.mrb[21].mxu1  ;;  %v4069_v30 = vpop.f32.mrb[22].mxu0  ;;  %4573 = vmatpush3.bf16.msra.mxu0 %v4843_v22 }
 0x1a7   : > { %v4132_v31 = vadd.f32 %v4131_v29, %v4130_v26  ;;  %v4133_v32 = vpop.f32.mrb[22].mxu1  ;;  %v4070_v33 = vpop.f32.mrb[23].mxu0 }
 0x1a8   : > { %v2273_v34 = vadd.f32 %v4068_v28, %v5447_v37  ;;  %v4071_v35 = vadd.f32 %v4070_v33, %v4069_v30  ;;  %v4134_v36 = vpop.f32.mrb[23].mxu1 }
 0x1a9   : > { %v4135_v39 = vadd.f32 %v4134_v36, %v4133_v32 }
 0x1aa   : > { %v5492_v40 = vadd.f32 %v4132_v31, %v2273_v34  ;;  %v2276_v41 = vadd.f32 %v4071_v35, %v5447_v37 }
 0x1ac   : > { %v5495_v43 = vadd.f32 %v4135_v39, %v2276_v41  ;;  %v4072_v44 = vpop.f32.mrb[24].mxu0 }
 0x1ad   : > { %v4136_v46 = vpop.f32.mrb[24].mxu1  ;;  %v4073_v47 = vpop.f32.mrb[25].mxu0 }
 0x1ae   : > { %v4074_v48 = vadd.f32 %v4073_v47, %v4072_v44  ;;  %v4137_v49 = vpop.f32.mrb[25].mxu1  ;;  %v4075_v50 = vpop.f32.mrb[26].mxu0 }
 0x1af   : > { %v4138_v51 = vadd.f32 %v4137_v49, %v4136_v46  ;;  %v4139_v52 = vpop.f32.mrb[26].mxu1  ;;  %v4076_v54 = vpop.f32.mrb[27].mxu0  ;;  %v4844_v46 = vld [vmem:[#allocation8 + $0x28] sm:$0xff]  }
 0x1b0   : > { %v2281_v55 = vadd.f32 %v4074_v48, %v5447_v37  ;;  %v4077_v56 = vadd.f32 %v4076_v54, %v4075_v50  ;;  %v4140_v58 = vpop.f32.mrb[27].mxu1  ;;  %4574 = vmatprep.subr.bf16.mxu0 %v4844_v46 }
 0x1b1   : > { %v4141_v59 = vadd.f32 %v4140_v58, %v4139_v52  ;;  %4575 = vmatpush3.bf16.msra.mxu0 %v4844_v46 }
 0x1b2   : > { %v5498_v60 = vadd.f32 %v4138_v51, %v2281_v55  ;;  %v2284_v61 = vadd.f32 %v4077_v56, %v5447_v37 }
 0x1b4   : > { %v5501_v62 = vadd.f32 %v4141_v59, %v2284_v61  ;;  %v4078_v63 = vpop.f32.mrb[28].mxu0 }
 0x1b5   : > { %v4142_v3 = vpop.f32.mrb[28].mxu1  ;;  %v4079_v4 = vpop.f32.mrb[29].mxu0 }
 0x1b6   : > { %v4080_v5 = vadd.f32 %v4079_v4, %v4078_v63  ;;  %v4143_v6 = vpop.f32.mrb[29].mxu1  ;;  %v4081_v7 = vpop.f32.mrb[30].mxu0  ;;  %v4846_v4 = vld [vmem:[#allocation8 + $0x38] sm:$0xff]  }
 0x1b7   : > { %v4144_v8 = vadd.f32 %v4143_v6, %v4142_v3  ;;  %v4145_v9 = vpop.f32.mrb[30].mxu1  ;;  %v4082_v10 = vpop.f32.mrb[31].mxu0 }
 0x1b8   : > { %v2289_v11 = vadd.f32 %v4080_v5, %v5447_v37  ;;  %v4083_v12 = vadd.f32 %v4082_v10, %v4081_v7  ;;  %v4146_v14 = vpop.f32.mrb[31].mxu1 }
 0x1b9   : > { %v4147_v15 = vadd.f32 %v4146_v14, %v4145_v9 }
 0x1ba   : > { %v5504_v16 = vadd.f32 %v4144_v8, %v2289_v11  ;;  %v2292_v18 = vadd.f32 %v4083_v12, %v5447_v37 }
 0x1bc   : > { %v5507_v19 = vadd.f32 %v4147_v15, %v2292_v18  ;;  %v4164_v20 = vpop.f32.mrb[32].mxu0 }
 0x1bd   : > { %v4228_v24 = vpop.f32.mrb[32].mxu1  ;;  %v4165_v25 = vpop.f32.mrb[33].mxu0 }
 0x1be   : > { %v4166_v26 = vadd.f32 %v4165_v25, %v4164_v20  ;;  %v4229_v27 = vpop.f32.mrb[33].mxu1  ;;  %v4167_v28 = vpop.f32.mrb[34].mxu0 }
 0x1bf   : > { %v4230_v29 = vadd.f32 %v4229_v27, %v4228_v24  ;;  %v4231_v30 = vpop.f32.mrb[34].mxu1  ;;  %v4168_v31 = vpop.f32.mrb[35].mxu0 }
 0x1c0   : > { %v2427_v32 = vadd.f32 %v4166_v26, %v5450_v53  ;;  %v4169_v33 = vadd.f32 %v4168_v31, %v4167_v28  ;;  %v4232_v34 = vpop.f32.mrb[35].mxu1 }
 0x1c1   : > { %v4233_v35 = vadd.f32 %v4232_v34, %v4231_v30 }
 0x1c2   : > { %v5510_v37 = vadd.f32 %v4230_v29, %v2427_v32  ;;  %v2430_v36 = vadd.f32 %v4169_v33, %v5455_v57  ;;  %v4845_v57 = vld [vmem:[#allocation8 + $0x30] sm:$0xff]  }
 0x1c3   : > { %4576 = vmatprep.subr.bf16.mxu0 %v4845_v57 }
 0x1c4   : > { %v5513_v39 = vadd.f32 %v4233_v35, %v2430_v36  ;;  %v4170_v41 = vpop.f32.mrb[36].mxu0  ;;  %4577 = vmatpush3.bf16.msra.mxu0 %v4845_v57 }
 0x1c5   : > { %v4234_v44 = vpop.f32.mrb[36].mxu1  ;;  %v4171_v45 = vpop.f32.mrb[37].mxu0  ;;  %4578 = vmatprep.subr.bf16.mxu0 %v4846_v4 }
 0x1c6   : > { %v4172_v47 = vadd.f32 %v4171_v45, %v4170_v41  ;;  %v4235_v48 = vpop.f32.mrb[37].mxu1  ;;  %v4173_v49 = vpop.f32.mrb[38].mxu0 }
 0x1c7   : > { %v4236_v50 = vadd.f32 %v4235_v48, %v4234_v44  ;;  %v4237_v51 = vpop.f32.mrb[38].mxu1  ;;  %v4174_v52 = vpop.f32.mrb[39].mxu0 }
 0x1c8   : > { %v2435_v53 = vadd.f32 %v4172_v47, %v5460_v13  ;;  %v4175_v54 = vadd.f32 %v4174_v52, %v4173_v49  ;;  %v4238_v55 = vpop.f32.mrb[39].mxu1  ;;  %4579 = vmatpush3.bf16.msra.mxu0 %v4846_v4 }
 0x1c9   : > { %v4239_v56 = vadd.f32 %v4238_v55, %v4237_v51 }
 0x1ca   : > { %v5516_v58 = vadd.f32 %v4236_v50, %v2435_v53  ;;  %v2438_v59 = vadd.f32 %v4175_v54, %v5465_v17 }
 0x1cc   : > { %v5519_v61 = vadd.f32 %v4239_v56, %v2438_v59  ;;  %v4176_v63 = vpop.f32.mrb[40].mxu0 }
 0x1cd   : > { %v4240_v1 = vpop.f32.mrb[40].mxu1  ;;  %v4177_v3 = vpop.f32.mrb[41].mxu0 }
 0x1ce   : > { %v4178_v5 = vadd.f32 %v4177_v3, %v4176_v63  ;;  %v4241_v6 = vpop.f32.mrb[41].mxu1  ;;  %v4179_v13 = vpop.f32.mrb[42].mxu0 }
 0x1cf   : > { %v4242_v7 = vadd.f32 %v4241_v6, %v4240_v1  ;;  %v4243_v8 = vpop.f32.mrb[42].mxu1  ;;  %v4180_v9 = vpop.f32.mrb[43].mxu0 }
 0x1d0   : > { %v2443_v10 = vadd.f32 %v4178_v5, %v5470_v38  ;;  %v4181_v11 = vadd.f32 %v4180_v9, %v4179_v13  ;;  %v4244_v12 = vpop.f32.mrb[43].mxu1 }
 0x1d1   : > { %v4245_v17 = vadd.f32 %v4244_v12, %v4243_v8 }
 0x1d2   : > { %v5522_v14 = vadd.f32 %v4242_v7, %v2443_v10  ;;  %v2446_v15 = vadd.f32 %v4181_v11, %v5475_v42 }
 0x1d4   : > { %v5525_v18 = vadd.f32 %v4245_v17, %v2446_v15  ;;  %v4182_v20 = vpop.f32.mrb[44].mxu0 }
 0x1d5   : > { %v4246_v22 = vpop.f32.mrb[44].mxu1  ;;  %v4183_v24 = vpop.f32.mrb[45].mxu0 }
 0x1d6   : > { %v4184_v25 = vadd.f32 %v4183_v24, %v4182_v20  ;;  %v4247_v26 = vpop.f32.mrb[45].mxu1  ;;  %v4185_v27 = vpop.f32.mrb[46].mxu0 }
 0x1d7   : > { %v4248_v28 = vadd.f32 %v4247_v26, %v4246_v22  ;;  %v4249_v29 = vpop.f32.mrb[46].mxu1  ;;  %v4186_v30 = vpop.f32.mrb[47].mxu0 }
 0x1d8   : > { %v2451_v38 = vadd.f32 %v4184_v25, %v5480_v0  ;;  %v4187_v31 = vadd.f32 %v4186_v30, %v4185_v27  ;;  %v4250_v32 = vpop.f32.mrb[47].mxu1 }
 0x1d9   : > { %v4251_v33 = vadd.f32 %v4250_v32, %v4249_v29 }
 0x1da   : > { %v5528_v34 = vadd.f32 %v4248_v28, %v2451_v38  ;;  %v2454_v42 = vadd.f32 %v4187_v31, %v5483_v2 }
 0x1dc   : > { %v5531_v35 = vadd.f32 %v4251_v33, %v2454_v42  ;;  %v4188_v36 = vpop.f32.mrb[48].mxu0 }
 0x1dd   : > { %v4252_v41 = vpop.f32.mrb[48].mxu1  ;;  %v4189_v44 = vpop.f32.mrb[49].mxu0 }
 0x1de   : > { %v4190_v45 = vadd.f32 %v4189_v44, %v4188_v36  ;;  %v4253_v46 = vpop.f32.mrb[49].mxu1  ;;  %v4191_v47 = vpop.f32.mrb[50].mxu0 }
 0x1df   : > { %v4254_v48 = vadd.f32 %v4253_v46, %v4252_v41  ;;  %v4255_v49 = vpop.f32.mrb[50].mxu1  ;;  %v4192_v50 = vpop.f32.mrb[51].mxu0 }
 0x1e0   : > { %v2459_v0 = vadd.f32 %v4190_v45, %v5486_v21  ;;  %v4193_v51 = vadd.f32 %v4192_v50, %v4191_v47  ;;  %v4256_v52 = vpop.f32.mrb[51].mxu1 }
 0x1e1   : > { %v4257_v53 = vadd.f32 %v4256_v52, %v4255_v49 }
 0x1e2   : > { %v5534_v54 = vadd.f32 %v4254_v48, %v2459_v0  ;;  %v2462_v2 = vadd.f32 %v4193_v51, %v5489_v23 }
 0x1e4   : > { %v5537_v55 = vadd.f32 %v4257_v53, %v2462_v2  ;;  %v4194_v56 = vpop.f32.mrb[52].mxu0 }
 0x1e5   : > { %v4258_v57 = vpop.f32.mrb[52].mxu1  ;;  %v4195_v59 = vpop.f32.mrb[53].mxu0 }
 0x1e6   : > { %v4196_v63 = vadd.f32 %v4195_v59, %v4194_v56  ;;  %v4259_v1 = vpop.f32.mrb[53].mxu1  ;;  %v4197_v3 = vpop.f32.mrb[54].mxu0 }
 0x1e7   : > { %v4260_v4 = vadd.f32 %v4259_v1, %v4258_v57  ;;  %v4261_v5 = vpop.f32.mrb[54].mxu1  ;;  %v4198_v6 = vpop.f32.mrb[55].mxu0 }
 0x1e8   : > { %v2467_v21 = vadd.f32 %v4196_v63, %v5492_v40  ;;  %v4199_v13 = vadd.f32 %v4198_v6, %v4197_v3  ;;  %v4262_v7 = vpop.f32.mrb[55].mxu1 }
 0x1e9   : > { %v4263_v8 = vadd.f32 %v4262_v7, %v4261_v5 }
 0x1ea   : > { %v5540_v9 = vadd.f32 %v4260_v4, %v2467_v21  ;;  %v2470_v23 = vadd.f32 %v4199_v13, %v5495_v43  ;;  %v4847_v21 = vld [vmem:[#allocation9] sm:$0xff]   ;;  %v4848_v13 = vld [vmem:[#allocation9 + $0x8] sm:$0xff]  }
 0x1eb   : > { %4596 = vmatprep.subr.bf16.mxu1 %v4847_v21 }
 0x1ec   : > { %v5543_v10 = vadd.f32 %v4263_v8, %v2470_v23  ;;  %v4200_v11 = vpop.f32.mrb[56].mxu0  ;;  %4597 = vmatpush3.bf16.msra.mxu1 %v4847_v21 }
 0x1ed   : > { %v4264_v12 = vpop.f32.mrb[56].mxu1  ;;  %v4201_v17 = vpop.f32.mrb[57].mxu0  ;;  %4598 = vmatprep.subr.bf16.mxu1 %v4848_v13 }
 0x1ee   : > { %v4202_v15 = vadd.f32 %v4201_v17, %v4200_v11  ;;  %v4265_v20 = vpop.f32.mrb[57].mxu1  ;;  %v4203_v22 = vpop.f32.mrb[58].mxu0 }
 0x1ef   : > { %v4266_v24 = vadd.f32 %v4265_v20, %v4264_v12  ;;  %v4267_v25 = vpop.f32.mrb[58].mxu1  ;;  %v4204_v26 = vpop.f32.mrb[59].mxu0 }
 0x1f0   : > { %v2475_v40 = vadd.f32 %v4202_v15, %v5498_v60  ;;  %v4205_v27 = vadd.f32 %v4204_v26, %v4203_v22  ;;  %v4268_v28 = vpop.f32.mrb[59].mxu1  ;;  %4599 = vmatpush3.bf16.msra.mxu1 %v4848_v13 }
 0x1f1   : > { %v4269_v29 = vadd.f32 %v4268_v28, %v4267_v25 }
 0x1f2   : > { %v5546_v30 = vadd.f32 %v4266_v24, %v2475_v40  ;;  %v2478_v43 = vadd.f32 %v4205_v27, %v5501_v62 }
 0x1f4   : > { %v5549_v38 = vadd.f32 %v4269_v29, %v2478_v43  ;;  %v4206_v31 = vpop.f32.mrb[60].mxu0  ;;  %v4850_v29 = vld [vmem:[#allocation9 + $0x18] sm:$0xff]  }
 0x1f5   : > { %v4270_v32 = vpop.f32.mrb[60].mxu1  ;;  %v4207_v33 = vpop.f32.mrb[61].mxu0 }
 0x1f6   : > { %v4208_v42 = vadd.f32 %v4207_v33, %v4206_v31  ;;  %v4271_v36 = vpop.f32.mrb[61].mxu1  ;;  %v4209_v41 = vpop.f32.mrb[62].mxu0 }
 0x1f7   : > { %v4272_v44 = vadd.f32 %v4271_v36, %v4270_v32  ;;  %v4273_v45 = vpop.f32.mrb[62].mxu1  ;;  %v4210_v46 = vpop.f32.mrb[63].mxu0 }
 0x1f8   : > { %v2483_v60 = vadd.f32 %v4208_v42, %v5504_v16  ;;  %v4211_v47 = vadd.f32 %v4210_v46, %v4209_v41  ;;  %v4274_v48 = vpop.f32.mrb[63].mxu1 }
 0x1f9   : > { %v4275_v49 = vadd.f32 %v4274_v48, %v4273_v45 }
 0x1fa   : > { %v5552_v50 = vadd.f32 %v4272_v44, %v2483_v60  ;;  %v2486_v62 = vadd.f32 %v4211_v47, %v5507_v19 }
 0x1fc   : > { %v5555_v0 = vadd.f32 %v4275_v49, %v2486_v62  ;;  %v4292_v51 = vpop.f32.mrb[64].mxu0 }
 0x1fd   : > { %v4356_v52 = vpop.f32.mrb[64].mxu1  ;;  %v4293_v53 = vpop.f32.mrb[65].mxu0 }
 0x1fe   : > { %v4294_v2 = vadd.f32 %v4293_v53, %v4292_v51  ;;  %v4357_v56 = vpop.f32.mrb[65].mxu1  ;;  %v4295_v57 = vpop.f32.mrb[66].mxu0  ;;  %v4852_v51 = vld [vmem:[#allocation9 + $0x28] sm:$0xff]  }
 0x1ff   : > { %v4358_v59 = vadd.f32 %v4357_v56, %v4356_v52  ;;  %v4359_v63 = vpop.f32.mrb[66].mxu1  ;;  %v4296_v1 = vpop.f32.mrb[67].mxu0 }
 0x200   : > { %v2621_v16 = vadd.f32 %v4294_v2, %v5510_v37  ;;  %v4297_v3 = vadd.f32 %v4296_v1, %v4295_v57  ;;  %v4360_v4 = vpop.f32.mrb[67].mxu1  ;;  %v4849_v37 = vld [vmem:[#allocation9 + $0x10] sm:$0xff]  }
 0x201   : > { %v4361_v5 = vadd.f32 %v4360_v4, %v4359_v63  ;;  %4600 = vmatprep.subr.bf16.mxu1 %v4849_v37 }
 0x202   : > { %v5558_v6 = vadd.f32 %v4358_v59, %v2621_v16  ;;  %v2624_v19 = vadd.f32 %v4297_v3, %v5513_v39  ;;  %4601 = vmatpush3.bf16.msra.mxu1 %v4849_v37 }
 0x203   : > { %4602 = vmatprep.subr.bf16.mxu1 %v4850_v29 }
 0x204   : > { %v5561_v7 = vadd.f32 %v4361_v5, %v2624_v19  ;;  %v4298_v8 = vpop.f32.mrb[68].mxu0 }
 0x205   : > { %v4362_v23 = vpop.f32.mrb[68].mxu1  ;;  %v4299_v11 = vpop.f32.mrb[69].mxu0 }
 0x206   : > { %v4300_v12 = vadd.f32 %v4299_v11, %v4298_v8  ;;  %v4363_v17 = vpop.f32.mrb[69].mxu1  ;;  %v4301_v15 = vpop.f32.mrb[70].mxu0  ;;  %4603 = vmatpush3.bf16.msra.mxu1 %v4850_v29 }
 0x207   : > { %v4364_v20 = vadd.f32 %v4363_v17, %v4362_v23  ;;  %v4365_v22 = vpop.f32.mrb[70].mxu1  ;;  %v4302_v24 = vpop.f32.mrb[71].mxu0 }
 0x208   : > { %v2629_v25 = vadd.f32 %v4300_v12, %v5516_v58  ;;  %v4303_v39 = vadd.f32 %v4302_v24, %v4301_v15  ;;  %v4366_v26 = vpop.f32.mrb[71].mxu1  ;;  %v4851_v58 = vld [vmem:[#allocation9 + $0x20] sm:$0xff]  }
 0x209   : > { %v4367_v40 = vadd.f32 %v4366_v26, %v4365_v22  ;;  %4604 = vmatprep.subr.bf16.mxu1 %v4851_v58 }
 0x20a   : > { %v5564_v27 = vadd.f32 %v4364_v20, %v2629_v25  ;;  %v2632_v28 = vadd.f32 %v4303_v39, %v5519_v61  ;;  %4605 = vmatpush3.bf16.msra.mxu1 %v4851_v58 }
 0x20b   : > { %4606 = vmatprep.subr.bf16.mxu1 %v4852_v51 }
 0x20c   : > { %v5567_v43 = vadd.f32 %v4367_v40, %v2632_v28  ;;  %v4304_v31 = vpop.f32.mrb[72].mxu0 }
 0x20d   : > { %v4368_v32 = vpop.f32.mrb[72].mxu1  ;;  %v4305_v33 = vpop.f32.mrb[73].mxu0 }
 0x20e   : > { %v4306_v42 = vadd.f32 %v4305_v33, %v4304_v31  ;;  %v4369_v36 = vpop.f32.mrb[73].mxu1  ;;  %v4307_v41 = vpop.f32.mrb[74].mxu0  ;;  %4607 = vmatpush3.bf16.msra.mxu1 %v4852_v51 }
 0x20f   : > { %v4370_v44 = vadd.f32 %v4369_v36, %v4368_v32  ;;  %v4371_v45 = vpop.f32.mrb[74].mxu1  ;;  %v4308_v46 = vpop.f32.mrb[75].mxu0 }
 0x210   : > { %v2637_v60 = vadd.f32 %v4306_v42, %v5522_v14  ;;  %v4309_v47 = vadd.f32 %v4308_v46, %v4307_v41  ;;  %v4372_v61 = vpop.f32.mrb[75].mxu1 }
 0x211   : > { %v4373_v48 = vadd.f32 %v4372_v61, %v4371_v45 }
 0x212   : > { %v5570_v49 = vadd.f32 %v4370_v44, %v2637_v60  ;;  %v2640_v62 = vadd.f32 %v4309_v47, %v5525_v18 }
 0x214   : > { %v5573_v52 = vadd.f32 %v4373_v48, %v2640_v62  ;;  %v4310_v53 = vpop.f32.mrb[76].mxu0 }
 0x215   : > { %v4374_v2 = vpop.f32.mrb[76].mxu1  ;;  %v4311_v56 = vpop.f32.mrb[77].mxu0 }
 0x216   : > { %v4312_v57 = vadd.f32 %v4311_v56, %v4310_v53  ;;  %v4375_v59 = vpop.f32.mrb[77].mxu1  ;;  %v4313_v63 = vpop.f32.mrb[78].mxu0 }
 0x217   : > { %v4376_v14 = vadd.f32 %v4375_v59, %v4374_v2  ;;  %v4377_v1 = vpop.f32.mrb[78].mxu1  ;;  %v4314_v16 = vpop.f32.mrb[79].mxu0 }
 0x218   : > { %v2645_v3 = vadd.f32 %v4312_v57, %v5528_v34  ;;  %v4315_v4 = vadd.f32 %v4314_v16, %v4313_v63  ;;  %v4378_v5 = vpop.f32.mrb[79].mxu1 }
 0x219   : > { %v4379_v18 = vadd.f32 %v4378_v5, %v4377_v1 }
 0x21a   : > { %v5576_v19 = vadd.f32 %v4376_v14, %v2645_v3  ;;  %v2648_v21 = vadd.f32 %v4315_v4, %v5531_v35 }
 0x21c   : > { %v5579_v13 = vadd.f32 %v4379_v18, %v2648_v21  ;;  %v4316_v8 = vpop.f32.mrb[80].mxu0 }
 0x21d   : > { %v4380_v23 = vpop.f32.mrb[80].mxu1  ;;  %v4317_v11 = vpop.f32.mrb[81].mxu0 }
 0x21e   : > { %v4318_v12 = vadd.f32 %v4317_v11, %v4316_v8  ;;  %v4381_v17 = vpop.f32.mrb[81].mxu1  ;;  %v4319_v15 = vpop.f32.mrb[82].mxu0 }
 0x21f   : > { %v4382_v37 = vadd.f32 %v4381_v17, %v4380_v23  ;;  %v4383_v20 = vpop.f32.mrb[82].mxu1  ;;  %v4320_v22 = vpop.f32.mrb[83].mxu0 }
 0x220   : > { %v2653_v34 = vadd.f32 %v4318_v12, %v5534_v54  ;;  %v4321_v24 = vadd.f32 %v4320_v22, %v4319_v15  ;;  %v4384_v25 = vpop.f32.mrb[83].mxu1 }
 0x221   : > { %v4385_v39 = vadd.f32 %v4384_v25, %v4383_v20 }
 0x222   : > { %v5582_v26 = vadd.f32 %v4382_v37, %v2653_v34  ;;  %v2656_v35 = vadd.f32 %v4321_v24, %v5537_v55 }
 0x224   : > { %v5585_v40 = vadd.f32 %v4385_v39, %v2656_v35  ;;  %v4322_v28 = vpop.f32.mrb[84].mxu0 }
 0x225   : > { %v4386_v29 = vpop.f32.mrb[84].mxu1  ;;  %v4323_v31 = vpop.f32.mrb[85].mxu0 }
 0x226   : > { %v4324_v32 = vadd.f32 %v4323_v31, %v4322_v28  ;;  %v4387_v33 = vpop.f32.mrb[85].mxu1  ;;  %v4325_v42 = vpop.f32.mrb[86].mxu0 }
 0x227   : > { %v4388_v36 = vadd.f32 %v4387_v33, %v4386_v29  ;;  %v4389_v41 = vpop.f32.mrb[86].mxu1  ;;  %v4326_v58 = vpop.f32.mrb[87].mxu0 }
 0x228   : > { %v2661_v54 = vadd.f32 %v4324_v32, %v5540_v9  ;;  %v4327_v44 = vadd.f32 %v4326_v58, %v4325_v42  ;;  %v4390_v45 = vpop.f32.mrb[87].mxu1 }
 0x229   : > { %v4391_v46 = vadd.f32 %v4390_v45, %v4389_v41 }
 0x22a   : > { %v5588_v60 = vadd.f32 %v4388_v36, %v2661_v54  ;;  %v2664_v55 = vadd.f32 %v4327_v44, %v5543_v10 }
 0x22c   : > { %v5591_v47 = vadd.f32 %v4391_v46, %v2664_v55  ;;  %v4328_v61 = vpop.f32.mrb[88].mxu0 }
 0x22d   : > { %v4392_v48 = vpop.f32.mrb[88].mxu1  ;;  %v4329_v62 = vpop.f32.mrb[89].mxu0 }
 0x22e   : > { %v4330_v51 = vadd.f32 %v4329_v62, %v4328_v61  ;;  %v4393_v53 = vpop.f32.mrb[89].mxu1  ;;  %v4331_v2 = vpop.f32.mrb[90].mxu0 }
 0x22f   : > { %v4394_v56 = vadd.f32 %v4393_v53, %v4392_v48  ;;  %v4395_v57 = vpop.f32.mrb[90].mxu1  ;;  %v4332_v59 = vpop.f32.mrb[91].mxu0 }
 0x230   : > { %v2669_v9 = vadd.f32 %v4330_v51, %v5546_v30  ;;  %v4333_v63 = vadd.f32 %v4332_v59, %v4331_v2  ;;  %v4396_v14 = vpop.f32.mrb[91].mxu1 }
 0x231   : > { %v4397_v1 = vadd.f32 %v4396_v14, %v4395_v57 }
 0x232   : > { %v5594_v16 = vadd.f32 %v4394_v56, %v2669_v9  ;;  %v2672_v10 = vadd.f32 %v4333_v63, %v5549_v38 }
 0x234   : > { %v5597_v3 = vadd.f32 %v4397_v1, %v2672_v10  ;;  %v4334_v4 = vpop.f32.mrb[92].mxu0 }
 0x235   : > { %v4398_v5 = vpop.f32.mrb[92].mxu1  ;;  %v4335_v18 = vpop.f32.mrb[93].mxu0 }
 0x236   : > { %v4336_v21 = vadd.f32 %v4335_v18, %v4334_v4  ;;  %v4399_v8 = vpop.f32.mrb[93].mxu1  ;;  %v4337_v23 = vpop.f32.mrb[94].mxu0 }
 0x237   : > { %v4400_v11 = vadd.f32 %v4399_v8, %v4398_v5  ;;  %v4401_v12 = vpop.f32.mrb[94].mxu1  ;;  %v4338_v17 = vpop.f32.mrb[95].mxu0 }
 0x238   : > { %v2677_v30 = vadd.f32 %v4336_v21, %v5552_v50  ;;  %v4339_v15 = vadd.f32 %v4338_v17, %v4337_v23  ;;  %v4402_v37 = vpop.f32.mrb[95].mxu1 }
 0x239   : > { %v4403_v20 = vadd.f32 %v4402_v37, %v4401_v12 }
 0x23a   : > { %v5600_v22 = vadd.f32 %v4400_v11, %v2677_v30  ;;  %v2680_v38 = vadd.f32 %v4339_v15, %v5555_v0 }
 0x23c   : > { %v5603_v34 = vadd.f32 %v4403_v20, %v2680_v38  ;;  %v4420_v24 = vpop.f32.mrb[96].mxu0 }
 0x23d   : > { %v4484_v25 = vpop.f32.mrb[96].mxu1  ;;  %v4421_v39 = vpop.f32.mrb[97].mxu0 }
 0x23e   : > { %v4422_v35 = vadd.f32 %v4421_v39, %v4420_v24  ;;  %v4485_v28 = vpop.f32.mrb[97].mxu1  ;;  %v4423_v29 = vpop.f32.mrb[98].mxu0 }
 0x23f   : > { %v4486_v31 = vadd.f32 %v4485_v28, %v4484_v25  ;;  %v4487_v32 = vpop.f32.mrb[98].mxu1  ;;  %v4424_v33 = vpop.f32.mrb[99].mxu0 }
 0x240   : > { %v2815_v50 = vadd.f32 %v4422_v35, %v5558_v6  ;;  %v4425_v42 = vadd.f32 %v4424_v33, %v4423_v29  ;;  %v4488_v36 = vpop.f32.mrb[99].mxu1 }
 0x241   : > { %v4489_v41 = vadd.f32 %v4488_v36, %v4487_v32 }
 0x242   : > { %v2912_v58 = vadd.f32 %v4486_v31, %v2815_v50  ;;  %v2818_v54 = vadd.f32 %v4425_v42, %v5561_v7 }
 0x244   : > { %v2915_v0 = vadd.f32 %v4489_v41, %v2818_v54  ;;  %v4426_v44 = vpop.f32.mrb[100].mxu0  ;;  %v2974_v55 = vmax.f32 %v2912_v58, 0.0 }
 0x245   : > { %v4490_v45 = vpop.f32.mrb[100].mxu1  ;;  %v4427_v46 = vpop.f32.mrb[101].mxu0 }
 0x246   : > { %v2975_v61 = vmax.f32 %v2915_v0, 0.0  ;;  %v4428_v48 = vadd.f32 %v4427_v46, %v4426_v44  ;;  %v4491_v62 = vpop.f32.mrb[101].mxu1  ;;  %v4429_v51 = vpop.f32.mrb[102].mxu0 }
 0x247   : > { %v4492_v53 = vadd.f32 %v4491_v62, %v4490_v45  ;;  %v4493_v2 = vpop.f32.mrb[102].mxu1  ;;  %v4430_v56 = vpop.f32.mrb[103].mxu0 }
 0x248   : > { %v2823_v6 = vadd.f32 %v4428_v48, %v5564_v27  ;;  %v4431_v57 = vadd.f32 %v4430_v56, %v4429_v51  ;;  %v4494_v59 = vpop.f32.mrb[103].mxu1  ;;  %v2990_v9 = vpack.c.bf16 %v2975_v61, %v2974_v55 }
 0x249   : > { %v4495_v63 = vadd.f32 %v4494_v59, %v4493_v2 }
 0x24a   : > { %v2920_v14 = vadd.f32 %v4492_v53, %v2823_v6  ;;  %v2826_v7 = vadd.f32 %v4431_v57, %v5567_v43  ;;  %4580 = vmatprep.mubr.bf16.mxu0 %v2990_v9 }
 0x24c   : > { %v2923_v1 = vadd.f32 %v4495_v63, %v2826_v7  ;;  %v4432_v10 = vpop.f32.mrb[104].mxu0  ;;  %v2976_v18 = vmax.f32 %v2920_v14, 0.0 }
 0x24d   : > { %v4496_v4 = vpop.f32.mrb[104].mxu1  ;;  %v4433_v5 = vpop.f32.mrb[105].mxu0 }
 0x24e   : > { %v2977_v21 = vmax.f32 %v2923_v1, 0.0  ;;  %v4434_v8 = vadd.f32 %v4433_v5, %v4432_v10  ;;  %v4497_v23 = vpop.f32.mrb[105].mxu1  ;;  %v4435_v11 = vpop.f32.mrb[106].mxu0 }
 0x24f   : > { %v4498_v12 = vadd.f32 %v4497_v23, %v4496_v4  ;;  %v4499_v17 = vpop.f32.mrb[106].mxu1  ;;  %v4436_v27 = vpop.f32.mrb[107].mxu0 }
 0x250   : > { %v2991_v30 = vpack.c.bf16 %v2977_v21, %v2976_v18  ;;  %v2831_v15 = vadd.f32 %v4434_v8, %v5570_v49  ;;  %v4437_v37 = vadd.f32 %v4436_v27, %v4435_v11  ;;  %v4500_v20 = vpop.f32.mrb[107].mxu1 }
 0x251   : > { %v4501_v38 = vadd.f32 %v4500_v20, %v4499_v17 }
 0x252   : > { %v2928_v43 = vadd.f32 %v4498_v12, %v2831_v15  ;;  %v2834_v24 = vadd.f32 %v4437_v37, %v5573_v52  ;;  %4581 = vmatmul.mubr.bf16.vlgmr.msra.gmra.mrb[128].mxu0 %v2991_v30 }
 0x254   : > { %v2931_v25 = vadd.f32 %v4501_v38, %v2834_v24  ;;  %v4438_v39 = vpop.f32.mrb[108].mxu0  ;;  %v2978_v29 = vmax.f32 %v2928_v43, 0.0 }
 0x255   : > { %v4502_v35 = vpop.f32.mrb[108].mxu1  ;;  %v4439_v28 = vpop.f32.mrb[109].mxu0 }
 0x256   : > { %v2979_v31 = vmax.f32 %v2931_v25, 0.0  ;;  %v4440_v32 = vadd.f32 %v4439_v28, %v4438_v39  ;;  %v4503_v33 = vpop.f32.mrb[109].mxu1  ;;  %v4441_v50 = vpop.f32.mrb[110].mxu0 }
 0x257   : > { %v4504_v42 = vadd.f32 %v4503_v33, %v4502_v35  ;;  %v4505_v36 = vpop.f32.mrb[110].mxu1  ;;  %v4442_v41 = vpop.f32.mrb[111].mxu0 }
 0x258   : > { %v2839_v49 = vadd.f32 %v4440_v32, %v5576_v19  ;;  %v4443_v58 = vadd.f32 %v4442_v41, %v4441_v50  ;;  %v4506_v54 = vpop.f32.mrb[111].mxu1  ;;  %v2992_v0 = vpack.c.bf16 %v2979_v31, %v2978_v29 }
 0x259   : > { %v4507_v44 = vadd.f32 %v4506_v54, %v4505_v36 }
 0x25a   : > { %v2936_v52 = vadd.f32 %v4504_v42, %v2839_v49  ;;  %v2842_v45 = vadd.f32 %v4443_v58, %v5579_v13  ;;  %4584 = vmatprep.mubr.bf16.mxu0 %v2992_v0 }
 0x25c   : > { %v2939_v46 = vadd.f32 %v4507_v44, %v2842_v45  ;;  %v4444_v55 = vpop.f32.mrb[112].mxu0  ;;  %v2980_v62 = vmax.f32 %v2936_v52, 0.0 }
 0x25d   : > { %v4445_v61 = vpop.f32.mrb[113].mxu0  ;;  %v4508_v48 = vpop.f32.mrb[112].mxu1 }
 0x25e   : > { %v2981_v51 = vmax.f32 %v2939_v46, 0.0  ;;  %v4446_v53 = vadd.f32 %v4445_v61, %v4444_v55  ;;  %v4447_v2 = vpop.f32.mrb[114].mxu0  ;;  %v4509_v56 = vpop.f32.mrb[113].mxu1 }
 0x25f   : > { %v4448_v6 = vpop.f32.mrb[115].mxu0  ;;  %v4510_v57 = vadd.f32 %v4509_v56, %v4508_v48  ;;  %v4511_v19 = vpop.f32.mrb[114].mxu1 }
 0x260   : > { %v2847_v59 = vadd.f32 %v4446_v53, %v5582_v26  ;;  %v4449_v9 = vadd.f32 %v4448_v6, %v4447_v2  ;;  %v4512_v63 = vpop.f32.mrb[115].mxu1  ;;  %v2993_v14 = vpack.c.bf16 %v2981_v51, %v2980_v62 }
 0x261   : > { %v4513_v7 = vadd.f32 %v4512_v63, %v4511_v19 }
 0x262   : > { %v2850_v13 = vadd.f32 %v4449_v9, %v5585_v40  ;;  %v2944_v1 = vadd.f32 %v4510_v57, %v2847_v59  ;;  %4585 = vmatmul.mubr.bf16.gmra.mrb[132].mxu0 %v2993_v14 }
 0x264   : > { %v2947_v10 = vadd.f32 %v4513_v7, %v2850_v13  ;;  %v4450_v4 = vpop.f32.mrb[116].mxu0  ;;  %v2982_v21 = vmax.f32 %v2944_v1, 0.0  ;;  %v4853_v1 = vld [vmem:[#allocation9 + $0x30] sm:$0xff]  }
 0x265   : > { %v4451_v5 = vpop.f32.mrb[117].mxu0  ;;  %v4514_v18 = vpop.f32.mrb[116].mxu1  ;;  %4608 = vmatprep.subr.bf16.mxu1 %v4853_v1 }
 0x266   : > { %v2983_v8 = vmax.f32 %v2947_v10, 0.0  ;;  %v4452_v23 = vadd.f32 %v4451_v5, %v4450_v4  ;;  %v4453_v11 = vpop.f32.mrb[118].mxu0  ;;  %v4515_v12 = vpop.f32.mrb[117].mxu1  ;;  %4609 = vmatpush3.bf16.msra.mxu1 %v4853_v1  ;;  %v4854_v10 = vld [vmem:[#allocation9 + $0x38] sm:$0xff]  }
 0x267   : > { %v4454_v17 = vpop.f32.mrb[119].mxu0  ;;  %v4516_v27 = vadd.f32 %v4515_v12, %v4514_v18  ;;  %v4517_v26 = vpop.f32.mrb[118].mxu1  ;;  %4610 = vmatprep.subr.bf16.mxu1 %v4854_v10 }
 0x268   : > { %v2855_v30 = vadd.f32 %v4452_v23, %v5588_v60  ;;  %v4455_v15 = vadd.f32 %v4454_v17, %v4453_v11  ;;  %v4518_v37 = vpop.f32.mrb[119].mxu1  ;;  %v2994_v20 = vpack.c.bf16 %v2983_v8, %v2982_v21 }
 0x269   : > { %v4519_v40 = vadd.f32 %v4518_v37, %v4517_v26 }
 0x26a   : > { %v2858_v38 = vadd.f32 %v4455_v15, %v5591_v47  ;;  %v2952_v43 = vadd.f32 %v4516_v27, %v2855_v30  ;;  %4588 = vmatprep.mubr.bf16.mxu0 %v2994_v20  ;;  %4611 = vmatpush3.bf16.msra.mxu1 %v4854_v10 }
 0x26c   : > { %v2955_v24 = vadd.f32 %v4519_v40, %v2858_v38  ;;  %v4456_v25 = vpop.f32.mrb[120].mxu0  ;;  %v2984_v28 = vmax.f32 %v2952_v43, 0.0 }
 0x26d   : > { %v4457_v39 = vpop.f32.mrb[121].mxu0  ;;  %v4520_v35 = vpop.f32.mrb[120].mxu1 }
 0x26e   : > { %v2985_v29 = vmax.f32 %v2955_v24, 0.0  ;;  %v4458_v31 = vadd.f32 %v4457_v39, %v4456_v25  ;;  %v4459_v32 = vpop.f32.mrb[122].mxu0  ;;  %v4521_v33 = vpop.f32.mrb[121].mxu1 }
 0x26f   : > { %v4460_v50 = vpop.f32.mrb[123].mxu0  ;;  %v4522_v42 = vadd.f32 %v4521_v33, %v4520_v35  ;;  %v4523_v60 = vpop.f32.mrb[122].mxu1 }
 0x270   : > { %v2863_v36 = vadd.f32 %v4458_v31, %v5594_v16  ;;  %v4461_v41 = vadd.f32 %v4460_v50, %v4459_v32  ;;  %v4524_v49 = vpop.f32.mrb[123].mxu1  ;;  %v2995_v58 = vpack.c.bf16 %v2985_v29, %v2984_v28 }
 0x271   : > { %v4525_v47 = vadd.f32 %v4524_v49, %v4523_v60 }
 0x272   : > { %v2866_v54 = vadd.f32 %v4461_v41, %v5597_v3  ;;  %v2960_v0 = vadd.f32 %v4522_v42, %v2863_v36  ;;  %4589 = vmatmul.mubr.bf16.gmra.mrb[136].mxu0 %v2995_v58 }
 0x274   : > { %v2963_v44 = vadd.f32 %v4525_v47, %v2866_v54  ;;  %v4462_v52 = vpop.f32.mrb[124].mxu0  ;;  %v2986_v55 = vmax.f32 %v2960_v0, 0.0 }
 0x275   : > { %v4463_v45 = vpop.f32.mrb[125].mxu0  ;;  %v4526_v46 = vpop.f32.mrb[124].mxu1 }
 0x276   : > { %v2987_v61 = vmax.f32 %v2963_v44, 0.0  ;;  %v4464_v48 = vadd.f32 %v4463_v45, %v4462_v52  ;;  %v4465_v62 = vpop.f32.mrb[126].mxu0  ;;  %v4527_v51 = vpop.f32.mrb[125].mxu1 }
 0x277   : > { %v4466_v53 = vpop.f32.mrb[127].mxu0  ;;  %v4528_v2 = vadd.f32 %v4527_v51, %v4526_v46  ;;  %v4529_v16 = vpop.f32.mrb[126].mxu1 }
 0x278   : > { %v2871_v56 = vadd.f32 %v4464_v48, %v5600_v22  ;;  %v4467_v6 = vadd.f32 %v4466_v53, %v4465_v62  ;;  %v4530_v57 = vpop.f32.mrb[127].mxu1  ;;  %v2996_v19 = vpack.c.bf16 %v2987_v61, %v2986_v55  ;;  %v3996_v22 = vld [vmem:[%s5785_s4] ss:$0 sm:$0xff] }
 0x279   : > { %v4531_v3 = vadd.f32 %v4530_v57, %v4529_v16 }
 0x27a   : > { %v2874_v59 = vadd.f32 %v4467_v6, %v5603_v34  ;;  %v2968_v9 = vadd.f32 %v4528_v2, %v2871_v56  ;;  %4592 = vmatprep.mubr.bf16.mxu0 %v2996_v19 }
 0x27c   : > { %v2971_v63 = vadd.f32 %v4531_v3, %v2874_v59  ;;  %v2988_v14 = vmax.f32 %v2968_v9, 0.0  ;;  %v5052_v9 = vmov 0  }
 0x27d   : > { %4709 = vset.pattern.permute.xlu1 %v5052_v9  ;;  %4710 = vset.pattern.permute.xlu0 %v5052_v9 }
 0x27e   : > { %v2989_v7 = vmax.f32 %v2971_v63, 0.0  ;;  %v5627_v63 = vld [vmem:[%s5787_s6] ss:$0 sm:$0xff] }
 0x280   : > { %v2997_v13 = vpack.c.bf16 %v2989_v7, %v2988_v14 }
 0x282   : > { %4593 = vmatmul.mubr.bf16.gmra.mrb[140].mxu0 %v2997_v13 }
 0x325   : > { %v4582_v4 = vpop.f32.mrb[128].mxu0 }
 0x326   : > { %v3112_v5 = vadd.f32 %v4582_v4, %v3996_v22  ;;  %v3103_v34 = vpop.f32.mrb[129].mxu0 }
 0x327   : > { %v3104_v18 = vadd.f32 %v3996_v22, %v3103_v34  ;;  %v4583_v21 = vpop.f32.mrb[130].mxu0 }
 0x328   : > { %v3115_v8 = vadd.f32 %v4583_v21, %v3996_v22  ;;  %v3106_v23 = vpop.f32.mrb[131].mxu0  ;;  %v3168_v12 = vmax.f32 %v3112_v5, 0.0 }
 0x329   : > { %v3107_v11 = vadd.f32 %v3996_v22, %v3106_v23  ;;  %v3166_v27 = vmax.f32 %v3104_v18, 0.0 }
 0x32a   : > { %v3169_v17 = vmax.f32 %v3115_v8, 0.0 }
 0x32b   : > { %v3167_v26 = vmax.f32 %v3107_v11, 0.0 }
 0x32c   : > { %v3183_v30 = vpack.c.bf16 %v3169_v17, %v3168_v12 }
 0x32d   : > { %v3182_v15 = vpack.c.bf16 %v3167_v26, %v3166_v27 }
 0x32f   : > { %4612 = vmatprep.mubr.bf16.mxu1 %v3182_v15 }
 0x330   : > { %4613 = vmatmul.mubr.bf16.vlgmr.msra.gmra.mrb[128].mxu1 %v3183_v30 }
 0x335   : > { %v4586_v37 = vpop.f32.mrb[132].mxu0 }
 0x336   : > { %v3128_v20 = vadd.f32 %v4586_v37, %v3996_v22  ;;  %v3119_v40 = vpop.f32.mrb[133].mxu0 }
 0x337   : > { %v3120_v38 = vadd.f32 %v3996_v22, %v3119_v40  ;;  %v4587_v43 = vpop.f32.mrb[134].mxu0 }
 0x338   : > { %v3131_v24 = vadd.f32 %v4587_v43, %v3996_v22  ;;  %v3122_v25 = vpop.f32.mrb[135].mxu0  ;;  %v3172_v35 = vmax.f32 %v3128_v20, 0.0 }
 0x339   : > { %v3123_v39 = vadd.f32 %v3996_v22, %v3122_v25  ;;  %v3170_v29 = vmax.f32 %v3120_v38, 0.0 }
 0x33a   : > { %v3173_v28 = vmax.f32 %v3131_v24, 0.0 }
 0x33b   : > { %v3171_v31 = vmax.f32 %v3123_v39, 0.0 }
 0x33c   : > { %v3185_v32 = vpack.c.bf16 %v3173_v28, %v3172_v35 }
 0x33d   : > { %v3184_v33 = vpack.c.bf16 %v3171_v31, %v3170_v29 }
 0x33f   : > { %4616 = vmatprep.mubr.bf16.mxu1 %v3184_v33 }
 0x340   : > { %4617 = vmatmul.mubr.bf16.gmra.mrb[132].mxu1 %v3185_v32 }
 0x345   : > { %v4590_v50 = vpop.f32.mrb[136].mxu0 }
 0x346   : > { %v3144_v42 = vadd.f32 %v4590_v50, %v3996_v22  ;;  %v3135_v60 = vpop.f32.mrb[137].mxu0 }
 0x347   : > { %v3136_v36 = vadd.f32 %v3996_v22, %v3135_v60  ;;  %v4591_v41 = vpop.f32.mrb[138].mxu0 }
 0x348   : > { %v3147_v49 = vadd.f32 %v4591_v41, %v3996_v22  ;;  %v3138_v58 = vpop.f32.mrb[139].mxu0  ;;  %v3176_v54 = vmax.f32 %v3144_v42, 0.0 }
 0x349   : > { %v3139_v47 = vadd.f32 %v3996_v22, %v3138_v58  ;;  %v3174_v44 = vmax.f32 %v3136_v36, 0.0 }
 0x34a   : > { %v3177_v0 = vmax.f32 %v3147_v49, 0.0 }
 0x34b   : > { %v3175_v52 = vmax.f32 %v3139_v47, 0.0 }
 0x34c   : > { %v3187_v45 = vpack.c.bf16 %v3177_v0, %v3176_v54 }
 0x34d   : > { %v3186_v46 = vpack.c.bf16 %v3175_v52, %v3174_v44 }
 0x34f   : > { %4620 = vmatprep.mubr.bf16.mxu1 %v3186_v46 }
 0x350   : > { %4621 = vmatmul.mubr.bf16.gmra.mrb[136].mxu1 %v3187_v45  ;;  %v3429_v45 = vld [vmem:[#allocation2] sm:$0x1] }
 0x355   : > { %v4594_v55 = vpop.f32.mrb[140].mxu0 }
 0x356   : > { %v3160_v61 = vadd.f32 %v4594_v55, %v3996_v22  ;;  %v3151_v48 = vpop.f32.mrb[141].mxu0 }
 0x357   : > { %v3152_v62 = vadd.f32 %v3996_v22, %v3151_v48  ;;  %v4595_v51 = vpop.f32.mrb[142].mxu0 }
 0x358   : > { %v3163_v53 = vadd.f32 %v4595_v51, %v3996_v22  ;;  %v3154_v2 = vpop.f32.mrb[143].mxu0  ;;  %v3180_v56 = vmax.f32 %v3160_v61, 0.0 }
 0x359   : > { %v3155_v16 = vadd.f32 %v3996_v22, %v3154_v2  ;;  %v3178_v57 = vmax.f32 %v3152_v62, 0.0  ;;  %v5634_v22 = vld [vmem:[%s5788_s7] ss:$0 sm:$0xff] }
 0x35a   : > { %v3181_v6 = vmax.f32 %v3163_v53, 0.0 }
 0x35b   : > { %v3179_v19 = vmax.f32 %v3155_v16, 0.0 }
 0x35c   : > { %v3189_v3 = vpack.c.bf16 %v3181_v6, %v3180_v56 }
 0x35d   : > { %v3188_v59 = vpack.c.bf16 %v3179_v19, %v3178_v57 }
 0x35f   : > { %4624 = vmatprep.mubr.bf16.mxu1 %v3188_v59 }
 0x360   : > { %4625 = vmatmul.mubr.bf16.gmra.mrb[140].mxu1 %v3189_v3 }
 0x403   : > { %v4614_v14 = vpop.f32.mrb[128].mxu1 }
 0x404   : > { %v3304_v7 = vadd.f32 %v4614_v14, %v5627_v63  ;;  %v3295_v13 = vpop.f32.mrb[129].mxu1 }
 0x405   : > { %v3296_v1 = vadd.f32 %v5627_v63, %v3295_v13  ;;  %v4615_v10 = vpop.f32.mrb[130].mxu1 }
 0x406   : > { %v3360_v4 = vmax.f32 %v3304_v7, 0.0  ;;  %v3307_v5 = vadd.f32 %v4615_v10, %v5627_v63  ;;  %v3298_v34 = vpop.f32.mrb[131].mxu1 }
 0x407   : > { %v3358_v18 = vmax.f32 %v3296_v1, 0.0  ;;  %v3299_v21 = vadd.f32 %v5627_v63, %v3298_v34 }
 0x408   : > { %v3361_v8 = vmax.f32 %v3307_v5, 0.0  ;;  %v3383_v23 = vmul.f32 %v5634_v22, %v3360_v4 }
 0x409   : > { %v3359_v11 = vmax.f32 %v3299_v21, 0.0  ;;  %v3381_v12 = vmul.f32 %v5634_v22, %v3358_v18  ;;  %v3435_v21 = vlaneseq }
 0x40a   : > { %3401 = vadd.xlane.f32.xlu1 %v3383_v23  ;;  %v3384_v17 = vmul.f32 %v5634_v22, %v3361_v8 }
 0x40b   : > { %3397 = vadd.xlane.f32.xlu0 %v3381_v12  ;;  %v3382_v27 = vmul.f32 %v5634_v22, %v3359_v11  ;;  %v5666_v8 = vshrl.u32 %v3435_v21, 7 }
 0x40d   : > { %v3437_v11 = vsub.s32 0, %v5666_v8 }
 0x40e   : > { %3403 = vadd.xlane.f32.xlu1 %v3384_v17 }
 0x40f   : > { %3399 = vadd.xlane.f32.xlu0 %v3382_v27 }
 0x413   : > { %v4618_v26 = vpop.f32.mrb[132].mxu1 }
 0x414   : > { %v3320_v30 = vadd.f32 %v4618_v26, %v5627_v63  ;;  %v3311_v15 = vpop.f32.mrb[133].mxu1 }
 0x415   : > { %v3312_v37 = vadd.f32 %v5627_v63, %v3311_v15  ;;  %v4619_v20 = vpop.f32.mrb[134].mxu1  ;;  %v5675_v15 = vand.u32 127, %v3435_v21 }
 0x416   : > { %v3364_v40 = vmax.f32 %v3320_v30, 0.0  ;;  %v3314_v38 = vpop.f32.mrb[135].mxu1  ;;  %v3323_v25 = vadd.f32 %v4619_v20, %v5627_v63 }
 0x417   : > { %v3315_v43 = vadd.f32 %v5627_v63, %v3314_v38  ;;  %v3362_v24 = vmax.f32 %v3312_v37, 0.0  ;;  %v3509_v38 = vadd.s32 4294967288, %v5675_v15 }
 0x418   : > { %v3387_v39 = vmul.f32 %v5634_v22, %v3364_v40  ;;  %v3365_v29 = vmax.f32 %v3323_v25, 0.0  ;;  %v3507_v25 = vsub.s32 %v5675_v15, %v5666_v8 }
 0x419   : > { %v3363_v35 = vmax.f32 %v3315_v43, 0.0  ;;  %v3385_v31 = vmul.f32 %v5634_v22, %v3362_v24 }
 0x41a   : > { %3409 = vadd.xlane.f32.xlu0 %v3387_v39  ;;  %v3388_v32 = vmul.f32 %v5634_v22, %v3365_v29  ;;  %v3516_v39 = vadd.s32 4294967280, %v5675_v15 }
 0x41b   : > { %v3386_v28 = vmul.f32 %v5634_v22, %v3363_v35 }
 0x41d   : > { %3407 = vadd.xlane.f32.xlu1 %v3386_v28 }
 0x41e   : > { %3405 = vadd.xlane.f32.xlu0 %v3385_v31  ;;  %v3512_v31 = vsub.s32 %v3509_v38, %v5666_v8 }
 0x422   : > { %3411 = vadd.xlane.f32.xlu0 %v3388_v32 }
 0x423   : > { %v4622_v33 = vpop.f32.mrb[136].mxu1 }
 0x424   : > { %v3336_v50 = vadd.f32 %v4622_v33, %v5627_v63  ;;  %v3327_v42 = vpop.f32.mrb[137].mxu1 }
 0x425   : > { %v3328_v60 = vadd.f32 %v5627_v63, %v3327_v42  ;;  %v4623_v36 = vpop.f32.mrb[138].mxu1  ;;  %v3519_v42 = vsub.s32 %v3516_v39, %v5666_v8 }
 0x426   : > { %v3368_v41 = vmax.f32 %v3336_v50, 0.0  ;;  %v3339_v49 = vadd.f32 %v4623_v36, %v5627_v63  ;;  %v3330_v58 = vpop.f32.mrb[139].mxu1 }
 0x427   : > { %v3366_v47 = vmax.f32 %v3328_v60, 0.0  ;;  %v3331_v0 = vadd.f32 %v5627_v63, %v3330_v58 }
 0x428   : > { %v3369_v54 = vmax.f32 %v3339_v49, 0.0  ;;  %v3391_v44 = vmul.f32 %v5634_v22, %v3368_v41  ;;  %v3523_v49 = vadd.s32 4294967272, %v5675_v15 }
 0x429   : > { %v3367_v46 = vmax.f32 %v3331_v0, 0.0  ;;  %v3389_v55 = vmul.f32 %v5634_v22, %v3366_v47  ;;  %v3530_v47 = vadd.s32 4294967264, %v5675_v15 }
 0x42a   : > { %3417 = vadd.xlane.f32.xlu0 %v3391_v44  ;;  %v3392_v52 = vmul.f32 %v5634_v22, %v3369_v54 }
 0x42b   : > { %v3390_v61 = vmul.f32 %v5634_v22, %v3367_v46  ;;  %v3526_v46 = vsub.s32 %v3523_v49, %v5666_v8 }
 0x42e   : > { %3432 = vperm.xlu1 %4709, %v3429_v45   ;;  %3413 = vadd.xlane.f32.xlu0 %v3389_v55 }
 0x432   : > { %3415 = vadd.xlane.f32.xlu0 %v3390_v61  ;;  %v3537_v61 = vadd.s32 4294967256, %v5675_v15 }
 0x433   : > { %v4626_v48 = vpop.f32.mrb[140].mxu1 }
 0x434   : > { %v3352_v62 = vadd.f32 %v4626_v48, %v5627_v63  ;;  %v3343_v51 = vpop.f32.mrb[141].mxu1 }
 0x435   : > { %v3344_v53 = vadd.f32 %v5627_v63, %v3343_v51  ;;  %v4627_v2 = vpop.f32.mrb[142].mxu1 }
 0x436   : > { %v3372_v16 = vmax.f32 %v3352_v62, 0.0  ;;  %v3346_v56 = vpop.f32.mrb[143].mxu1  ;;  %v3355_v3 = vadd.f32 %v4627_v2, %v5627_v63  ;;  %v3533_v62 = vsub.s32 %v3530_v47, %v5666_v8 }
 0x437   : > { %v3370_v6 = vmax.f32 %v3344_v53, 0.0  ;;  %v3347_v57 = vadd.f32 %v5627_v63, %v3346_v56  ;;  %v3544_v56 = vadd.s32 4294967248, %v5675_v15 }
 0x438   : > { %v3395_v19 = vmul.f32 %v5634_v22, %v3372_v16  ;;  %v3373_v14 = vmax.f32 %v3355_v3, 0.0  ;;  %v3540_v3 = vsub.s32 %v3537_v61, %v5666_v8 }
 0x439   : > { %v3371_v59 = vmax.f32 %v3347_v57, 0.0  ;;  %v3393_v9 = vmul.f32 %v5634_v22, %v3370_v6 }
 0x43a   : > { %3425 = vadd.xlane.f32.xlu0 %v3395_v19  ;;  %v3396_v13 = vmul.f32 %v5634_v22, %v3373_v14 }
 0x43b   : > { %v3394_v7 = vmul.f32 %v5634_v22, %v3371_v59  ;;  %v3551_v59 = vadd.s32 4294967240, %v5675_v15 }
 0x43e   : > { %3421 = vadd.xlane.f32.xlu0 %v3393_v9 }
 0x442   : > { %3423 = vadd.xlane.f32.xlu0 %v3394_v7 }
 0x446   : > { %3427 = vadd.xlane.f32.xlu0 %v3396_v13  ;;  %v3572_v13 = vadd.s32 4294967216, %v5675_v15 }
 0x452   : > { %3419 = vadd.xlane.f32.xlu1 %v3392_v52 }
 0x497   : > { %v3402_v4 = vpop.xlane.xlu1 %3401 }
 0x498   : > { %v3398_v1 = vpop.xlane.xlu0 %3397 }
 0x49b   : > { %v3404_v34 = vpop.xlane.xlu1 %3403 }
 0x49c   : > { %v3400_v10 = vpop.xlane.xlu0 %3399 }
 0x4a7   : > { %v3410_v5 = vpop.xlane.xlu0 %3409 }
 0x4aa   : > { %v3408_v63 = vpop.xlane.xlu1 %3407 }
 0x4ab   : > { %v3406_v18 = vpop.xlane.xlu0 %3405 }
 0x4ae   : > { %v3433_v12 = vpop.permute.xlu1 %3432 }
 0x4af   : > { %v3412_v23 = vpop.xlane.xlu0 %3411  ;;  %v5671_v27 = vrot.slane %v3433_v12, %v3437_v11  ;;  %v3554_v11 = vsub.s32 %v3551_v59, %v5666_v8 }
 0x4b1   : > { %v3439_v26 = vadd.f32 %v5671_v27, %v3398_v1  ;;  %v3440_v30 = vadd.f32 %v5671_v27, %v3400_v10  ;;  %v3441_v37 = vadd.f32 %v5671_v27, %v3402_v4  ;;  %v3442_v35 = vadd.f32 %v5671_v27, %v3404_v34 }
 0x4b2   : > { %v3443_v33 = vadd.f32 %v5671_v27, %v3406_v18  ;;  %v3444_v58 = vadd.f32 %v5671_v27, %v3408_v63  ;;  %v3445_v55 = vadd.f32 %v5671_v27, %v3410_v5  ;;  %v3446_v6 = vadd.f32 %v5671_v27, %v3412_v23 }
 0x4b3   : > { %v3455_v20 = vmax.f32 %v3439_v26, 0.0  ;;  %v3456_v40 = vmax.f32 %v3440_v30, 0.0  ;;  %v3457_v24 = vmax.f32 %v3441_v37, 0.0  ;;  %v3458_v60 = vmax.f32 %v3442_v35, 0.0 }
 0x4b4   : > { %v3459_v54 = vmax.f32 %v3443_v33, 0.0  ;;  %v3460_v48 = vmax.f32 %v3444_v58, 0.0  ;;  %v3461_v19 = vmax.f32 %v3445_v55, 0.0  ;;  %v3558_v10 = vadd.s32 4294967232, %v5675_v15 }
 0x4b5   : > { %v3471_v28 = vmin.f32 %v3455_v20, 50.0  ;;  %v3472_v29 = vmin.f32 %v3456_v40, 50.0  ;;  %v3473_v50 = vmin.f32 %v3457_v24, 50.0  ;;  %v3474_v52 = vmin.f32 %v3458_v60, 50.0 }
 0x4b6   : > { %v3475_v51 = vmin.f32 %v3459_v54, 50.0  ;;  %v3476_v14 = vmin.f32 %v3460_v48, 50.0  ;;  %v3565_v5 = vadd.s32 4294967224, %v5675_v15  ;;  %v3547_v34 = vsub.s32 %v3544_v56, %v5666_v8 }
 0x4b7   : > { %v5669_v17 = vpop.xlane.xlu0 %3417  ;;  %v3508_v36 = vrot.slane %v3471_v28, %v3507_v25  ;;  %v3513_v41 = vrot.slane %v3472_v29, %v3512_v31  ;;  %v3520_v0 = vrot.slane %v3473_v50, %v3519_v42  ;;  %v3527_v16 = vrot.slane %v3474_v52, %v3526_v46 }
 0x4b8   : > { %v3534_v1 = vrot.slane %v3475_v51, %v3533_v62  ;;  %v3462_v18 = vmax.f32 %v3446_v6, 0.0  ;;  %v3477_v63 = vmin.f32 %v3461_v19, 50.0  ;;  %v3449_v12 = vadd.f32 %v5671_v27, %v5669_v17 }
 0x4b9   : > { %v3515_v45 = vsel %vm3514_vm0, %v3513_v41, %v3508_v36  ;;  %v3575_v26 = vsub.s32 %v3572_v13, %v5666_v8  ;;  %v3561_v30 = vsub.s32 %v3558_v10, %v5666_v8  ;;  %v3568_v20 = vsub.s32 %v3565_v5, %v5666_v8 }
 0x4ba   : > { %v3522_v53 = vsel %vm3521_vm1, %v3520_v0, %v3515_v45  ;;  %v3478_v24 = vmin.f32 %v3462_v18, 50.0  ;;  %v3548_v17 = vrot.slane %v3477_v63, %v3547_v34  ;;  %v3465_v35 = vmax.f32 %v3449_v12, 0.0 }
 0x4bb   : > { %v3414_v22 = vpop.xlane.xlu0 %3413  ;;  %v3529_v7 = vsel %vm3528_vm2, %v3527_v16, %v3522_v53  ;;  %v3586_v29 = vadd.s32 4294967200, %v5675_v15  ;;  %v3579_v33 = vadd.s32 4294967208, %v5675_v15  ;;  %v3593_v36 = vadd.s32 4294967192, %v5675_v15 }
 0x4bc   : > { %v3447_v2 = vadd.f32 %v5671_v27, %v3414_v22  ;;  %v3536_v23 = vsel %vm3535_vm3, %v3534_v1, %v3529_v7  ;;  %v3541_v22 = vrot.slane %v3476_v14, %v3540_v3  ;;  %v3555_v49 = vrot.slane %v3478_v24, %v3554_v11 }
 0x4bd   : > { %v3600_v0 = vadd.s32 4294967184, %v5675_v15  ;;  %v3607_v52 = vadd.s32 4294967176, %v5675_v15  ;;  %v3582_v55 = vsub.s32 %v3579_v33, %v5666_v8  ;;  %v3589_v62 = vsub.s32 %v3586_v29, %v5666_v8 }
 0x4be   : > { %v3463_v4 = vmax.f32 %v3447_v2, 0.0  ;;  %v3596_v53 = vsub.s32 %v3593_v36, %v5666_v8 }
 0x4bf   : > { %v3416_v43 = vpop.xlane.xlu0 %3415  ;;  %v3603_v56 = vsub.s32 %v3600_v0, %v5666_v8 }
 0x4c0   : > { %v3448_v57 = vadd.f32 %v5671_v27, %v3416_v43  ;;  %v3479_v37 = vmin.f32 %v3463_v4, 50.0  ;;  %v3543_v43 = vsel %vm3542_vm4, %v3541_v22, %v3536_v23 }
 0x4c1   : > { %v3550_v50 = vsel %vm3549_vm5, %v3548_v17, %v3543_v43 }
 0x4c2   : > { %v3464_v21 = vmax.f32 %v3448_v57, 0.0  ;;  %v3562_v42 = vrot.slane %v3479_v37, %v3561_v30  ;;  %v3557_v45 = vsel %vm3556_vm6, %v3555_v49, %v3550_v50  ;;  %v3610_v57 = vsub.s32 %v3607_v52, %v5666_v8 }
 0x4c4   : > { %v3480_v25 = vmin.f32 %v3464_v21, 50.0  ;;  %v3564_v48 = vsel %vm3563_vm7, %v3562_v42, %v3557_v45 }
 0x4c6   : > { %v3569_v58 = vrot.slane %v3480_v25, %v3568_v20 }
 0x4c7   : > { %v5684_v32 = vpop.xlane.xlu0 %3425 }
 0x4c8   : > { %v3453_v28 = vadd.f32 %v5671_v27, %v5684_v32  ;;  %v3481_v32 = vmin.f32 %v3465_v35, 50.0 }
 0x4ca   : > { %v3576_v15 = vrot.slane %v3481_v32, %v3575_v26 }
 0x4cb   : > { %v3422_v44 = vpop.xlane.xlu0 %3421 }
 0x4cc   : > { %v3451_v40 = vadd.f32 %v5671_v27, %v3422_v44  ;;  %v3469_v44 = vmax.f32 %v3453_v28, 0.0 }
 0x4ce   : > { %v3467_v60 = vmax.f32 %v3451_v40, 0.0  ;;  %v3485_v6 = vmin.f32 %v3469_v44, 50.0 }
 0x4cf   : > { %v3424_v9 = vpop.xlane.xlu0 %3423 }
 0x4d0   : > { %v3452_v39 = vadd.f32 %v5671_v27, %v3424_v9  ;;  %v3483_v51 = vmin.f32 %v3467_v60, 50.0  ;;  %v3604_v13 = vrot.slane %v3485_v6, %v3603_v56 }
 0x4d2   : > { %v3468_v47 = vmax.f32 %v3452_v39, 0.0  ;;  %v3590_v59 = vrot.slane %v3483_v51, %v3589_v62 }
 0x4d3   : > { %v3428_v38 = vpop.xlane.xlu0 %3427 }
 0x4d4   : > { %v3454_v31 = vadd.f32 %v5671_v27, %v3428_v38  ;;  %v3484_v2 = vmin.f32 %v3468_v47, 50.0 }
 0x4d6   : > { %v3470_v46 = vmax.f32 %v3454_v31, 0.0  ;;  %v3597_v14 = vrot.slane %v3484_v2, %v3596_v53 }
 0x4d8   : > { %v3486_v19 = vmin.f32 %v3470_v46, 50.0 }
 0x4da   : > { %v3611_v10 = vrot.slane %v3486_v19, %v3610_v57 }
 0x4df   : > { %v3420_v41 = vpop.xlane.xlu1 %3419 }
 0x4e0   : > { %v3450_v54 = vadd.f32 %v5671_v27, %v3420_v41  ;;  %v3571_v27 = vsel %vm3570_vm8, %v3569_v58, %v3564_v48 }
 0x4e1   : > { %v3578_v9 = vsel %vm3577_vm9, %v3576_v15, %v3571_v27 }
 0x4e2   : > { %v3466_v61 = vmax.f32 %v3450_v54, 0.0 }
 0x4e4   : > { %v3482_v16 = vmin.f32 %v3466_v61, 50.0 }
 0x4e6   : > { %v3583_v3 = vrot.slane %v3482_v16, %v3582_v55 }
 0x4e8   : > { %v3585_v7 = vsel %vm3584_vm10, %v3583_v3, %v3578_v9 }
 0x4e9   : > { %v3592_v1 = vsel %vm3591_vm11, %v3590_v59, %v3585_v7 }
 0x4ea   : > { %v3599_v4 = vsel %vm3598_vm12, %v3597_v14, %v3592_v1 }
 0x4eb   : > { %v3606_v8 = vsel %vm3605_vm13, %v3604_v13, %v3599_v4 }
 0x4ec   : > { %v3613_v5 = vsel %vm3612_vm14, %v3611_v10, %v3606_v8 }
 0x4ed   : > { %3615 = vst [vmem:[%s396_s30] sm:$0x1] %v3613_v5 }
 0x4ee   : > { %4982 = shalt.err (!%p4979_p4)
}
 0x4ef   : > { %s4983_s25 = scalar_lea.hbm %s5737_s29, 16  ;;  %s4987_s11 = scalar_lea.hbm %s5790_s9, 32 }
 0x4f0   : > { %p4984_p9 = scmp.ne.s32.totalorder %s5737_s29, %s4983_s25  ;;  %p4988_p8 = scmp.lt.u32.totalorder %s5737_s29, %s5790_s9 }
 0x4f1   : > { %p4989_p13 = scmp.lt.u32.totalorder %s4987_s11, %s4983_s25  ;;  %p4991_p10 = scmp.lt.u32.totalorder %s4983_s25, %s5737_s29 }
 0x4f2   : > { %p4985_p0 = pnand %p4984_p9, %p5261_p5 }
 0x4f3   : > { %p4990_p6 = por %p4989_p13, %p4988_p8 }
 0x4f4   : > { %p4986_p11 = pneg %p4985_p0 }
 0x4f5   : > { %p4992_p3 = por %p4991_p10, %p4990_p6 }
 0x4f7   : > { %p4993_p7 = pnand %p4992_p3, %p4986_p11 }
 0x4f9   : > { %4996 = shalt.err (!%p4993_p7)
}
 0x4fa   : > { %4642 = dma.vmem_to_hbm [thread:$0]  (%p5261_p5), %s5739_s21, 16, %s5737_s29, %s3617_s8  }
 0x4fb PF: > { %s5812_s30 = sld [smem:[#allocation16_spill]]  ;;  %s5813_s26 = sld [smem:[#allocation17_spill]] }
 0x4fc   : > { %p5815_p1 = scmp.ge.s32.totalorder %s5043_s14, 2 }
 0x501   : > { %s3641_s15 = sand.u32 1, %s5812_s30   ;;  %p5814_p12 = scmp.ne.s32.totalorder %s5813_s26, 0 }
 0x502   : > { %s3642_s16 = scalar_lea.sflag [#allocation5], %s3641_s15 }
 0x503   : > { %p4659_p2 = pnand %p5815_p1, %p5814_p12 }
 0x505   : > { %5026 = dma.done.wait (!%p4659_p2), %s3642_s16, 16  }
 0x506   : > { %5028 = vsyncadd (!%p4659_p2), %s3642_s16, 4294967280  ;;  %p26_p4 = scmp.ge.s32.totalorder %s5247_s10, 4   ;;  %s5816_s11 = smov %s5035_s12 }
 0x507   : > { %s5817_s12 = smov %s5039_s13  ;;  %s5818_s13 = smov %s5257_s27 }
 0x508   : > { %s5819_s14 = smov %s5247_s10  ;;  %28 = sbr.rel (!%p26_p4) target bundleno = 10 (0xa), region = 113 }
 0x50f   :  { %3646 = vsyncpa [#allocation4], 1 }
 0x510   :  { %3648 = vsyncpa [#allocation4 + $0x1], 1 }
 0x511   :  { %3649 = vsyncpa [#allocation7], 1 }
 0x512   :  { %3650 = vsyncpa [#allocation10], 1 }
 0x513   :  { %3651 = vsyncpa [#allocation5], 1 }
 0x514   :  { %3653 = vsyncpa [#allocation5 + $0x1], 1 }

</bundles_post_ra>
